<compile_context>
chip_gen: v5e
topology: v5e:2x2
jax: 0.10.0
libtpu: 0.0.40
codegen_flags: <defaults>
</compile_context>

<pallas_src>
import functools

import jax
import jax.numpy as jnp
from jax.experimental import pallas as pl
from jax.experimental.pallas import tpu as pltpu


def _round_up(x, m):
    return (x + m - 1) // m * m


def _pick_batch_tile(batch):
    """Generation-aware batch tile (rows per grid step)."""
    try:
        kind = jax.devices()[0].device_kind.lower()
    except Exception:  # pragma: no cover - defensive
        kind = ""
    # v6e / v7x: 256-wide MXU passes -> 256-row tiles.  v5e (128-wide MXU,
    # single vst slot): keep 128 and the smaller vreg working set.
    cap = 256 if ("v6" in kind or "v7" in kind) else 128
    # Dual-TensorCore v7x: prefer >=2 grid steps so dimension_semantics
    # ("parallel",) actually shards the batch across both cores.
    if "v7" in kind and 128 < batch <= 256:
        cap = 128
    return min(cap, _round_up(batch, 8))


def outcome_predictor_kernel(x_ref, len_ref,
                             wih_f_ref, b_f_ref, whh_f_ref,
                             wih_b_ref, b_b_ref,
                             w1_ref, b1_ref, w2_ref, b2_ref,
                             out_ref, gin_ref, *, hidden):
    """One batch tile: bi-LSTM last-step features + MLP head.

    x_ref    : [T, TB, D]   bf16 time-major trajectories (batch tile)
    len_ref  : [TB, 1]      i32 valid sequence lengths
    wih_f    : [D, 4H] bf16 (fwd gates, column order i,f,o,g), b_f : [1,4H] f32
    whh_f    : [H, 4H] bf16 (same column order)
    wih_b    : [D, 3H] bf16 (bwd gates, column order i,o,g),   b_b : [1,3H] f32
    w1       : [2H, dense] bf16, b1 : [1, dense] f32
    w2       : [1, dense] f32 (row), b2 : [1, 1] f32
    out_ref  : [1, TB] f32 (lane-dense row of predictions)
    gin_ref  : VMEM scratch [T, TB, 4H] f32 (hoisted forward input gates)
    """
    T, TB, D = x_ref.shape
    H = hidden
    G = 4 * H

    x = x_ref[...]                                     # [T, TB, D] bf16
    last_t = len_ref[...] - 1                          # [TB, 1] i32
    # TODO(synk): rows with length 0 or length > T never match last_t; their
    # forward feature stays zero and the backward step sees x_last == 0 (bias
    # only).  Inputs must be pre-validated upstream (same as the reference).

    # ---- hoisted forward input projection, off the serial path -------------
    gin = jnp.dot(x.reshape(T * TB, D), wih_f_ref[...],
                  preferred_element_type=jnp.float32) + b_f_ref[...]
    gin_ref[...] = gin.reshape(T, TB, G)

    # ---- backward direction, fully hoisted: select x[len-1], one matmul ----
    x_last = jnp.zeros((TB, D), x.dtype)
    for t in range(T):                                 # static, off critical path
        x_last = jnp.where(last_t == t, x[t], x_last)
    gb = jnp.dot(x_last, wih_b_ref[...],
                 preferred_element_type=jnp.float32) + b_b_ref[...]   # [TB, 3H]
    sig_b = jax.nn.sigmoid(gb[:, :2 * H])              # (i, o); f unused (c0=0)
    c_b = sig_b[:, :H] * jnp.tanh(gb[:, 2 * H:])
    h_bwd = sig_b[:, H:2 * H] * jnp.tanh(c_b)          # [TB, H]

    # ---- forward recurrence: only the dependent [TB,H]@[H,4H] matmul -------
    whh = whh_f_ref[...]                               # bf16, resident in vregs
    zeros_bh = jnp.zeros((TB, H), jnp.float32)

    def body(t, carry):
        h, c, h_sel = carry
        gates = gin_ref[t] + jnp.dot(h.astype(jnp.bfloat16), whh,
                                     preferred_element_type=jnp.float32)
        sig = jax.nn.sigmoid(gates[:, :3 * H])         # contiguous (i,f,o) slab
        g = jnp.tanh(gates[:, 3 * H:])
        c = sig[:, H:2 * H] * c + sig[:, :H] * g       # f*c + i*g
        h = sig[:, 2 * H:3 * H] * jnp.tanh(c)          # o*tanh(c)
        h_sel = jnp.where(last_t == t, h, h_sel)
        return h, c, h_sel

    unroll = True if T <= 16 else 4
    _, _, h_fwd = jax.lax.fori_loop(
        0, T, body, (zeros_bh, zeros_bh, zeros_bh), unroll=unroll)

    # ---- dense head ---------------------------------------------------------
    feat = jnp.concatenate([h_fwd, h_bwd], axis=-1).astype(jnp.bfloat16)
    hid = jnp.maximum(
        jnp.dot(feat, w1_ref[...], preferred_element_type=jnp.float32)
        + b1_ref[...], 0.0)                            # [TB, dense]
    # final projection to 1: VPU multiply + lane reduce (no N=1 MXU matmul)
    out_row = jnp.sum(hid * w2_ref[...], axis=-1)      # [TB]
    out_ref[...] = out_row[None, :] + b2_ref[...]      # lane-dense [1, TB]


@functools.partial(jax.jit, static_argnames=("batch_tile", "time_major"))
def outcome_predictor_forward(x, lengths, params, *, batch_tile=None,
                              time_major=False):
    """x: [B,T,D] f32 (or [T,B,D] if time_major), lengths: [B] i32 -> [B] f32."""
    if time_major:
        T, B, D = x.shape
    else:
        B, T, D = x.shape
    H = params["whh_f"].shape[0]
    dense = params["w1"].shape[1]
    H2, H3 = 2 * H, 3 * H

    if batch_tile is None:
        batch_tile = _pick_batch_tile(B)
    TB = batch_tile
    Bp = _round_up(max(B, TB), TB)
    pad = Bp - B

    # time-major, padded, bf16 activations for the MXU projections
    xb = x.astype(jnp.bfloat16)
    if not time_major:
        xb = jnp.transpose(xb, (1, 0, 2))              # [T, B, D]
    x_tbd = jnp.pad(xb, ((0, 0), (0, pad), (0, 0)))
    len2d = jnp.pad(lengths.astype(jnp.int32), (0, pad),
                    constant_values=1).reshape(Bp, 1)

    # gate-column reorder (PyTorch order i,f,g,o -> kernel order i,f,o | g)
    def fwd_reorder(w):
        return jnp.concatenate([w[..., :H2], w[..., H3:], w[..., H2:H3]],
                               axis=-1)

    wih_f = fwd_reorder(params["wih_f"]).astype(jnp.bfloat16)   # [D, 4H]
    b_f = fwd_reorder(params["b_f"]).astype(jnp.float32)        # [1, 4H]
    whh_f = fwd_reorder(params["whh_f"]).astype(jnp.bfloat16)   # [H, 4H]

    # backward direction only needs (i, o | g) columns (f multiplies c0 == 0)
    wb, bb = params["wih_b"], params["b_b"]
    wih_b = jnp.concatenate([wb[:, :H], wb[:, H3:], wb[:, H2:H3]],
                            axis=1).astype(jnp.bfloat16)        # [D, 3H]
    b_b = jnp.concatenate([bb[:, :H], bb[:, H3:], bb[:, H2:H3]],
                          axis=1).astype(jnp.float32)           # [1, 3H]

    w1 = params["w1"].astype(jnp.bfloat16)                      # [2H, dense]
    b1 = params["b1"].astype(jnp.float32)
    w2_row = params["w2"].T.astype(jnp.float32)                 # [1, dense]
    b2 = params["b2"].astype(jnp.float32)                       # [1, 1]

    grid = (Bp // TB,)
    kernel = functools.partial(outcome_predictor_kernel, hidden=H)

    def full(shape):
        return pl.BlockSpec(shape, lambda i: (0,) * len(shape))

    out = pl.pallas_call(
        kernel,
        out_shape=jax.ShapeDtypeStruct((1, Bp), jnp.float32),
        grid=grid,
        in_specs=[
            pl.BlockSpec((T, TB, D), lambda i: (0, i, 0)),   # x (batch-tiled)
            pl.BlockSpec((TB, 1), lambda i: (i, 0)),         # lengths
            full((D, 4 * H)),                                # wih fwd (i,f,o,g)
            full((1, 4 * H)),                                # bias fwd
            full((H, 4 * H)),                                # whh fwd
            full((D, 3 * H)),                                # wih bwd (i,o,g)
            full((1, 3 * H)),                                # bias bwd
            full((2 * H, dense)),                            # w1
            full((1, dense)),                                # b1
            full((1, dense)),                                # w2 (row)
            full((1, 1)),                                    # b2
        ],
        out_specs=pl.BlockSpec((1, TB), lambda i: (0, i)),   # lane-dense row
        scratch_shapes=[pltpu.VMEM((T, TB, 4 * H), jnp.float32)],
        compiler_params=pltpu.CompilerParams(
            dimension_semantics=("parallel",),
            vmem_limit_bytes=32 * 1024 * 1024),
    )(x_tbd, len2d, wih_f, b_f, whh_f, wih_b, b_b, w1, b1, w2_row, b2)

    return out[0, :B]                                    # squeeze -> [B]


def init_params(key, input_dim=132, lstm_hidden=64, dense_hidden=128):
    """Synthetic init mirroring the PyTorch module's shapes.

    W_ih / W_hh stored transposed ([in, 4H], PyTorch gate order i,f,g,o);
    b_ih + b_hh pre-summed.
    """
    ks = jax.random.split(key, 12)
    H = lstm_hidden
    k_lstm = 1.0 / jnp.sqrt(H)

    def u(k, shape, bound):
        return jax.random.uniform(k, shape, jnp.float32, -bound, bound)

    return {
        "wih_f": u(ks[0], (input_dim, 4 * H), k_lstm),
        "whh_f": u(ks[1], (H, 4 * H), k_lstm),
        "b_f":   u(ks[2], (1, 4 * H), k_lstm) + u(ks[3], (1, 4 * H), k_lstm),
        "wih_b": u(ks[4], (input_dim, 4 * H), k_lstm),
        "whh_b": u(ks[5], (H, 4 * H), k_lstm),   # reference only (h0 = 0)
        "b_b":   u(ks[6], (1, 4 * H), k_lstm) + u(ks[7], (1, 4 * H), k_lstm),
        "w1": u(ks[8], (2 * H, dense_hidden), 1.0 / jnp.sqrt(2 * H)),
        "b1": u(ks[9], (1, dense_hidden), 1.0 / jnp.sqrt(2 * H)),
        "w2": u(ks[10], (dense_hidden, 1), 1.0 / jnp.sqrt(dense_hidden)),
        "b2": u(ks[11], (1, 1), 1.0 / jnp.sqrt(dense_hidden)),
    }


def reference_forward(x_btd, lengths, params):
    """Pure-JAX f32 reference with identical packed-sequence semantics."""
    B, T, D = x_btd.shape
    H = params["whh_f"].shape[0]

    def cell(x_t, h, c, wih, whh, b):
        gates = x_t @ wih + h @ whh + b
        i = jax.nn.sigmoid(gates[:, 0 * H:1 * H])
        f = jax.nn.sigmoid(gates[:, 1 * H:2 * H])
        g = jnp.tanh(gates[:, 2 * H:3 * H])
        o = jax.nn.sigmoid(gates[:, 3 * H:4 * H])
        c = f * c + i * g
        h = o * jnp.tanh(c)
        return h, c

    outs = []
    for b in range(B):
        L = int(lengths[b])
        h = jnp.zeros((1, H), jnp.float32)
        c = jnp.zeros((1, H), jnp.float32)
        for t in range(L):
            h, c = cell(x_btd[b:b + 1, t], h, c,
                        params["wih_f"], params["whh_f"], params["b_f"])
        hb, _ = cell(x_btd[b:b + 1, L - 1],
                     jnp.zeros((1, H), jnp.float32),
                     jnp.zeros((1, H), jnp.float32),
                     params["wih_b"], params["whh_b"], params["b_b"])
        feat = jnp.concatenate([h, hb], axis=-1)
        hid = jnp.maximum(feat @ params["w1"] + params["b1"], 0.0)
        outs.append((hid @ params["w2"] + params["b2"])[0, 0])
    return jnp.stack(outs)


if __name__ == "__main__":
    # Small deterministic example: B=2 plays, T=8 timesteps, 22 players * 6 = 132.
    B, T = 2, 8
    player_count, feature_dim = 22, 6
    D = player_count * feature_dim
    H, DENSE = 64, 128

    key = jax.random.PRNGKey(0)
    k_x, k_p = jax.random.split(key)

    x = jax.random.normal(k_x, (B, T, D), dtype=jnp.float32)
    lengths = jnp.array([T, 5], dtype=jnp.int32)   # variable valid lengths
    params = init_params(k_p, input_dim=D, lstm_hidden=H, dense_hidden=DENSE)

    preds = outcome_predictor_forward(x, lengths, params)     # [B]
    preds = jax.block_until_ready(preds)
    assert preds.shape == (B,)

    ref = reference_forward(x, lengths, params)
    assert jnp.allclose(preds, ref, rtol=5e-2, atol=5e-2), (preds, ref)

    print("KERNEL_OK")
</pallas_src>

<mosaic_0001>
module attributes {stable_mosaic.version = 11 : i64} {
  func.func @outcome_predictor_kernel(%arg0: i32, %arg1: memref<8x8x132xbf16, #tpu.memory_space<vmem>>, %arg2: memref<8x1xi32, #tpu.memory_space<vmem>>, %arg3: memref<132x256xbf16, #tpu.memory_space<vmem>>, %arg4: memref<1x256xf32, #tpu.memory_space<vmem>>, %arg5: memref<64x256xbf16, #tpu.memory_space<vmem>>, %arg6: memref<132x192xbf16, #tpu.memory_space<vmem>>, %arg7: memref<1x192xf32, #tpu.memory_space<vmem>>, %arg8: memref<128x128xbf16, #tpu.memory_space<vmem>>, %arg9: memref<1x128xf32, #tpu.memory_space<vmem>>, %arg10: memref<1x128xf32, #tpu.memory_space<vmem>>, %arg11: memref<1x1xf32, #tpu.memory_space<vmem>>, %arg12: memref<1x8xf32, #tpu.memory_space<vmem>>, %arg13: memref<8x8x256xf32, #tpu.memory_space<vmem>>) attributes {dimension_semantics = [#tpu.dimension_semantics<parallel>], iteration_bounds = array<i64: 1>, scalar_prefetch = 0 : i64, scratch_operands = 1 : i64, tpu.core_type = #tpu.core_type<tc>, window_params = [{transform_indices = @transform_0, window_bounds = array<i64: 8, 8, 132>}, {transform_indices = @transform_1, window_bounds = array<i64: 8, 1>}, {pipeline_mode = #tpu.pipeline_mode<synchronous>, transform_indices = @transform_2, window_bounds = array<i64: 132, 256>}, {pipeline_mode = #tpu.pipeline_mode<synchronous>, transform_indices = @transform_3, window_bounds = array<i64: 1, 256>}, {pipeline_mode = #tpu.pipeline_mode<synchronous>, transform_indices = @transform_4, window_bounds = array<i64: 64, 256>}, {pipeline_mode = #tpu.pipeline_mode<synchronous>, transform_indices = @transform_5, window_bounds = array<i64: 132, 192>}, {pipeline_mode = #tpu.pipeline_mode<synchronous>, transform_indices = @transform_6, window_bounds = array<i64: 1, 192>}, {pipeline_mode = #tpu.pipeline_mode<synchronous>, transform_indices = @transform_7, window_bounds = array<i64: 128, 128>}, {pipeline_mode = #tpu.pipeline_mode<synchronous>, transform_indices = @transform_8, window_bounds = array<i64: 1, 128>}, {pipeline_mode = #tpu.pipeline_mode<synchronous>, transform_indices = @transform_9, window_bounds = array<i64: 1, 128>}, {pipeline_mode = #tpu.pipeline_mode<synchronous>, transform_indices = @transform_10, window_bounds = array<i64: 1, 1>}, {transform_indices = @transform_11, window_bounds = array<i64: 1, 8>}]} {
    %c0 = arith.constant 0 : index
    %c0_0 = arith.constant 0 : index
    %c0_1 = arith.constant 0 : index
    %0 = vector.load %arg1[%c0, %c0_0, %c0_1] : memref<8x8x132xbf16, #tpu.memory_space<vmem>>, vector<8x8x132xbf16>
    %c0_2 = arith.constant 0 : index
    %c0_3 = arith.constant 0 : index
    %1 = vector.load %arg2[%c0_2, %c0_3] : memref<8x1xi32, #tpu.memory_space<vmem>>, vector<8x1xi32>
    %c1_i32 = arith.constant 1 : i32
    %2 = vector.broadcast %c1_i32 : i32 to vector<8x1xi32>
    %3 = arith.subi %1, %2 : vector<8x1xi32>
    %4 = vector.shape_cast %0 : vector<8x8x132xbf16> to vector<64x132xbf16>
    %c0_4 = arith.constant 0 : index
    %c0_5 = arith.constant 0 : index
    %5 = vector.load %arg3[%c0_4, %c0_5] : memref<132x256xbf16, #tpu.memory_space<vmem>>, vector<132x256xbf16>
    %cst = arith.constant dense<0.000000e+00> : vector<64x256xf32>
    %6 = tpu.matmul %4, %5, %cst {dimension_numbers = #tpu.dot_dimension_numbers<[1], [0], [0], [1], [0, 0, 1, 1], [], []>} : vector<64x132xbf16>, vector<132x256xbf16>, vector<64x256xf32> -> vector<64x256xf32>
    %c0_6 = arith.constant 0 : index
    %c0_7 = arith.constant 0 : index
    %7 = vector.load %arg4[%c0_6, %c0_7] : memref<1x256xf32, #tpu.memory_space<vmem>>, vector<1x256xf32>
    %8 = vector.broadcast %7 : vector<1x256xf32> to vector<64x256xf32>
    %9 = arith.addf %6, %8 : vector<64x256xf32>
    %10 = vector.shape_cast %9 : vector<64x256xf32> to vector<8x8x256xf32>
    %c0_8 = arith.constant 0 : index
    %c0_9 = arith.constant 0 : index
    %c0_10 = arith.constant 0 : index
    %11 = vector.load %arg13[%c0_8, %c0_9, %c0_10] : memref<8x8x256xf32, #tpu.memory_space<vmem>>, vector<8x8x256xf32>
    tpu.vector_store %arg13[%c0_8, %c0_9, %c0_10], %10 {strides = array<i32>} : memref<8x8x256xf32, #tpu.memory_space<vmem>>, vector<8x8x256xf32>,
    %cst_11 = arith.constant 0.000000e+00 : bf16
    %12 = vector.broadcast %cst_11 : bf16 to vector<8x132xbf16>
    %c0_i32 = arith.constant 0 : i32
    %13 = vector.broadcast %c0_i32 : i32 to vector<8x1xi32>
    %14 = arith.cmpi eq, %3, %13 : vector<8x1xi32>
    %15 = vector.extract_strided_slice %0 {offsets = [0, 0, 0], sizes = [1, 8, 132], strides = [1, 1, 1]} : vector<8x8x132xbf16> to vector<1x8x132xbf16>
    %16 = vector.shape_cast %15 : vector<1x8x132xbf16> to vector<8x132xbf16>
    %17 = vector.shape_cast %14 : vector<8x1xi1> to vector<8x1xi1>
    %18 = vector.broadcast %17 : vector<8x1xi1> to vector<8x132xi1>
    %19 = arith.select %18, %16, %12 : vector<8x132xi1>, vector<8x132xbf16>
    %c1_i32_12 = arith.constant 1 : i32
    %20 = vector.broadcast %c1_i32_12 : i32 to vector<8x1xi32>
    %21 = arith.cmpi eq, %3, %20 : vector<8x1xi32>
    %22 = vector.extract_strided_slice %0 {offsets = [1, 0, 0], sizes = [1, 8, 132], strides = [1, 1, 1]} : vector<8x8x132xbf16> to vector<1x8x132xbf16>
    %23 = vector.shape_cast %22 : vector<1x8x132xbf16> to vector<8x132xbf16>
    %24 = vector.shape_cast %21 : vector<8x1xi1> to vector<8x1xi1>
    %25 = vector.broadcast %24 : vector<8x1xi1> to vector<8x132xi1>
    %26 = arith.select %25, %23, %19 : vector<8x132xi1>, vector<8x132xbf16>
    %c2_i32 = arith.constant 2 : i32
    %27 = vector.broadcast %c2_i32 : i32 to vector<8x1xi32>
    %28 = arith.cmpi eq, %3, %27 : vector<8x1xi32>
    %29 = vector.extract_strided_slice %0 {offsets = [2, 0, 0], sizes = [1, 8, 132], strides = [1, 1, 1]} : vector<8x8x132xbf16> to vector<1x8x132xbf16>
    %30 = vector.shape_cast %29 : vector<1x8x132xbf16> to vector<8x132xbf16>
    %31 = vector.shape_cast %28 : vector<8x1xi1> to vector<8x1xi1>
    %32 = vector.broadcast %31 : vector<8x1xi1> to vector<8x132xi1>
    %33 = arith.select %32, %30, %26 : vector<8x132xi1>, vector<8x132xbf16>
    %c3_i32 = arith.constant 3 : i32
    %34 = vector.broadcast %c3_i32 : i32 to vector<8x1xi32>
    %35 = arith.cmpi eq, %3, %34 : vector<8x1xi32>
    %36 = vector.extract_strided_slice %0 {offsets = [3, 0, 0], sizes = [1, 8, 132], strides = [1, 1, 1]} : vector<8x8x132xbf16> to vector<1x8x132xbf16>
    %37 = vector.shape_cast %36 : vector<1x8x132xbf16> to vector<8x132xbf16>
    %38 = vector.shape_cast %35 : vector<8x1xi1> to vector<8x1xi1>
    %39 = vector.broadcast %38 : vector<8x1xi1> to vector<8x132xi1>
    %40 = arith.select %39, %37, %33 : vector<8x132xi1>, vector<8x132xbf16>
    %c4_i32 = arith.constant 4 : i32
    %41 = vector.broadcast %c4_i32 : i32 to vector<8x1xi32>
    %42 = arith.cmpi eq, %3, %41 : vector<8x1xi32>
    %43 = vector.extract_strided_slice %0 {offsets = [4, 0, 0], sizes = [1, 8, 132], strides = [1, 1, 1]} : vector<8x8x132xbf16> to vector<1x8x132xbf16>
    %44 = vector.shape_cast %43 : vector<1x8x132xbf16> to vector<8x132xbf16>
    %45 = vector.shape_cast %42 : vector<8x1xi1> to vector<8x1xi1>
    %46 = vector.broadcast %45 : vector<8x1xi1> to vector<8x132xi1>
    %47 = arith.select %46, %44, %40 : vector<8x132xi1>, vector<8x132xbf16>
    %c5_i32 = arith.constant 5 : i32
    %48 = vector.broadcast %c5_i32 : i32 to vector<8x1xi32>
    %49 = arith.cmpi eq, %3, %48 : vector<8x1xi32>
    %50 = vector.extract_strided_slice %0 {offsets = [5, 0, 0], sizes = [1, 8, 132], strides = [1, 1, 1]} : vector<8x8x132xbf16> to vector<1x8x132xbf16>
    %51 = vector.shape_cast %50 : vector<1x8x132xbf16> to vector<8x132xbf16>
    %52 = vector.shape_cast %49 : vector<8x1xi1> to vector<8x1xi1>
    %53 = vector.broadcast %52 : vector<8x1xi1> to vector<8x132xi1>
    %54 = arith.select %53, %51, %47 : vector<8x132xi1>, vector<8x132xbf16>
    %c6_i32 = arith.constant 6 : i32
    %55 = vector.broadcast %c6_i32 : i32 to vector<8x1xi32>
    %56 = arith.cmpi eq, %3, %55 : vector<8x1xi32>
    %57 = vector.extract_strided_slice %0 {offsets = [6, 0, 0], sizes = [1, 8, 132], strides = [1, 1, 1]} : vector<8x8x132xbf16> to vector<1x8x132xbf16>
    %58 = vector.shape_cast %57 : vector<1x8x132xbf16> to vector<8x132xbf16>
    %59 = vector.shape_cast %56 : vector<8x1xi1> to vector<8x1xi1>
    %60 = vector.broadcast %59 : vector<8x1xi1> to vector<8x132xi1>
    %61 = arith.select %60, %58, %54 : vector<8x132xi1>, vector<8x132xbf16>
    %c7_i32 = arith.constant 7 : i32
    %62 = vector.broadcast %c7_i32 : i32 to vector<8x1xi32>
    %63 = arith.cmpi eq, %3, %62 : vector<8x1xi32>
    %64 = vector.extract_strided_slice %0 {offsets = [7, 0, 0], sizes = [1, 8, 132], strides = [1, 1, 1]} : vector<8x8x132xbf16> to vector<1x8x132xbf16>
    %65 = vector.shape_cast %64 : vector<1x8x132xbf16> to vector<8x132xbf16>
    %66 = vector.shape_cast %63 : vector<8x1xi1> to vector<8x1xi1>
    %67 = vector.broadcast %66 : vector<8x1xi1> to vector<8x132xi1>
    %68 = arith.select %67, %65, %61 : vector<8x132xi1>, vector<8x132xbf16>
    %c0_13 = arith.constant 0 : index
    %c0_14 = arith.constant 0 : index
    %69 = vector.load %arg6[%c0_13, %c0_14] : memref<132x192xbf16, #tpu.memory_space<vmem>>, vector<132x192xbf16>
    %cst_15 = arith.constant dense<0.000000e+00> : vector<8x192xf32>
    %70 = tpu.matmul %68, %69, %cst_15 {dimension_numbers = #tpu.dot_dimension_numbers<[1], [0], [0], [1], [0, 0, 1, 1], [], []>} : vector<8x132xbf16>, vector<132x192xbf16>, vector<8x192xf32> -> vector<8x192xf32>
    %c0_16 = arith.constant 0 : index
    %c0_17 = arith.constant 0 : index
    %71 = vector.load %arg7[%c0_16, %c0_17] : memref<1x192xf32, #tpu.memory_space<vmem>>, vector<1x192xf32>
    %72 = vector.broadcast %71 : vector<1x192xf32> to vector<8x192xf32>
    %73 = arith.addf %70, %72 : vector<8x192xf32>
    %74 = vector.extract_strided_slice %73 {offsets = [0, 0], sizes = [8, 128], strides = [1, 1]} : vector<8x192xf32> to vector<8x128xf32>
    %75 = arith.negf %74 : vector<8x128xf32>
    %76 = math.exp %75 : vector<8x128xf32>
    %cst_18 = arith.constant 1.000000e+00 : f32
    %77 = vector.broadcast %cst_18 : f32 to vector<8x128xf32>
    %78 = arith.addf %77, %76 : vector<8x128xf32>
    %79 = arith.divf %77, %78 : vector<8x128xf32>
    %80 = vector.extract_strided_slice %79 {offsets = [0, 0], sizes = [8, 64], strides = [1, 1]} : vector<8x128xf32> to vector<8x64xf32>
    %81 = vector.extract_strided_slice %73 {offsets = [0, 128], sizes = [8, 64], strides = [1, 1]} : vector<8x192xf32> to vector<8x64xf32>
    %82 = math.tanh %81 : vector<8x64xf32>
    %83 = arith.mulf %80, %82 : vector<8x64xf32>
    %84 = vector.extract_strided_slice %79 {offsets = [0, 64], sizes = [8, 64], strides = [1, 1]} : vector<8x128xf32> to vector<8x64xf32>
    %85 = math.tanh %83 : vector<8x64xf32>
    %86 = arith.mulf %84, %85 : vector<8x64xf32>
    %c0_19 = arith.constant 0 : index
    %c0_20 = arith.constant 0 : index
    %87 = vector.load %arg5[%c0_19, %c0_20] : memref<64x256xbf16, #tpu.memory_space<vmem>>, vector<64x256xbf16>
    %cst_21 = arith.constant 0.000000e+00 : f32
    %88 = vector.broadcast %cst_21 : f32 to vector<8x64xf32>
    %c0_i32_22 = arith.constant 0 : i32
    %89 = arith.index_cast %c0_i32_22 : i32 to index
    %c0_23 = arith.constant 0 : index
    %c0_24 = arith.constant 0 : index
    %90 = vector.load %arg13[%89, %c0_23, %c0_24] : memref<8x8x256xf32, #tpu.memory_space<vmem>>, vector<1x8x256xf32>
    %91 = vector.shape_cast %90 : vector<1x8x256xf32> to vector<8x256xf32>
    %92 = arith.truncf %88 : vector<8x64xf32> to vector<8x64xbf16>
    %cst_25 = arith.constant dense<0.000000e+00> : vector<8x256xf32>
    %93 = tpu.matmul %92, %87, %cst_25 {dimension_numbers = #tpu.dot_dimension_numbers<[1], [0], [0], [1], [0, 0, 1, 1], [], []>} : vector<8x64xbf16>, vector<64x256xbf16>, vector<8x256xf32> -> vector<8x256xf32>
    %94 = arith.addf %91, %93 : vector<8x256xf32>
    %95 = vector.extract_strided_slice %94 {offsets = [0, 0], sizes = [8, 192], strides = [1, 1]} : vector<8x256xf32> to vector<8x192xf32>
    %96 = arith.negf %95 : vector<8x192xf32>
    %97 = math.exp %96 : vector<8x192xf32>
    %cst_26 = arith.constant 1.000000e+00 : f32
    %98 = vector.broadcast %cst_26 : f32 to vector<8x192xf32>
    %99 = arith.addf %98, %97 : vector<8x192xf32>
    %100 = arith.divf %98, %99 : vector<8x192xf32>
    %101 = vector.extract_strided_slice %94 {offsets = [0, 192], sizes = [8, 64], strides = [1, 1]} : vector<8x256xf32> to vector<8x64xf32>
    %102 = math.tanh %101 : vector<8x64xf32>
    %103 = vector.extract_strided_slice %100 {offsets = [0, 64], sizes = [8, 64], strides = [1, 1]} : vector<8x192xf32> to vector<8x64xf32>
    %104 = arith.mulf %103, %88 : vector<8x64xf32>
    %105 = vector.extract_strided_slice %100 {offsets = [0, 0], sizes = [8, 64], strides = [1, 1]} : vector<8x192xf32> to vector<8x64xf32>
    %106 = arith.mulf %105, %102 : vector<8x64xf32>
    %107 = arith.addf %104, %106 : vector<8x64xf32>
    %108 = vector.extract_strided_slice %100 {offsets = [0, 128], sizes = [8, 64], strides = [1, 1]} : vector<8x192xf32> to vector<8x64xf32>
    %109 = math.tanh %107 : vector<8x64xf32>
    %110 = arith.mulf %108, %109 : vector<8x64xf32>
    %111 = vector.broadcast %c0_i32_22 : i32 to vector<8x1xi32>
    %112 = arith.cmpi eq, %3, %111 : vector<8x1xi32>
    %113 = vector.shape_cast %112 : vector<8x1xi1> to vector<8x1xi1>
    %114 = vector.broadcast %113 : vector<8x1xi1> to vector<8x64xi1>
    %115 = arith.select %114, %110, %88 : vector<8x64xi1>, vector<8x64xf32>
    %c1_i32_27 = arith.constant 1 : i32
    %116 = arith.index_cast %c1_i32_27 : i32 to index
    %c0_28 = arith.constant 0 : index
    %c0_29 = arith.constant 0 : index
    %117 = vector.load %arg13[%116, %c0_28, %c0_29] : memref<8x8x256xf32, #tpu.memory_space<vmem>>, vector<1x8x256xf32>
    %118 = vector.shape_cast %117 : vector<1x8x256xf32> to vector<8x256xf32>
    %119 = arith.truncf %110 : vector<8x64xf32> to vector<8x64xbf16>
    %cst_30 = arith.constant dense<0.000000e+00> : vector<8x256xf32>
    %120 = tpu.matmul %119, %87, %cst_30 {dimension_numbers = #tpu.dot_dimension_numbers<[1], [0], [0], [1], [0, 0, 1, 1], [], []>} : vector<8x64xbf16>, vector<64x256xbf16>, vector<8x256xf32> -> vector<8x256xf32>
    %121 = arith.addf %118, %120 : vector<8x256xf32>
    %122 = vector.extract_strided_slice %121 {offsets = [0, 0], sizes = [8, 192], strides = [1, 1]} : vector<8x256xf32> to vector<8x192xf32>
    %123 = arith.negf %122 : vector<8x192xf32>
    %124 = math.exp %123 : vector<8x192xf32>
    %cst_31 = arith.constant 1.000000e+00 : f32
    %125 = vector.broadcast %cst_31 : f32 to vector<8x192xf32>
    %126 = arith.addf %125, %124 : vector<8x192xf32>
    %127 = arith.divf %125, %126 : vector<8x192xf32>
    %128 = vector.extract_strided_slice %121 {offsets = [0, 192], sizes = [8, 64], strides = [1, 1]} : vector<8x256xf32> to vector<8x64xf32>
    %129 = math.tanh %128 : vector<8x64xf32>
    %130 = vector.extract_strided_slice %127 {offsets = [0, 64], sizes = [8, 64], strides = [1, 1]} : vector<8x192xf32> to vector<8x64xf32>
    %131 = arith.mulf %130, %107 : vector<8x64xf32>
    %132 = vector.extract_strided_slice %127 {offsets = [0, 0], sizes = [8, 64], strides = [1, 1]} : vector<8x192xf32> to vector<8x64xf32>
    %133 = arith.mulf %132, %129 : vector<8x64xf32>
    %134 = arith.addf %131, %133 : vector<8x64xf32>
    %135 = vector.extract_strided_slice %127 {offsets = [0, 128], sizes = [8, 64], strides = [1, 1]} : vector<8x192xf32> to vector<8x64xf32>
    %136 = math.tanh %134 : vector<8x64xf32>
    %137 = arith.mulf %135, %136 : vector<8x64xf32>
    %138 = vector.broadcast %c1_i32_27 : i32 to vector<8x1xi32>
    %139 = arith.cmpi eq, %3, %138 : vector<8x1xi32>
    %140 = vector.shape_cast %139 : vector<8x1xi1> to vector<8x1xi1>
    %141 = vector.broadcast %140 : vector<8x1xi1> to vector<8x64xi1>
    %142 = arith.select %141, %137, %115 : vector<8x64xi1>, vector<8x64xf32>
    %c2_i32_32 = arith.constant 2 : i32
    %143 = arith.index_cast %c2_i32_32 : i32 to index
    %c0_33 = arith.constant 0 : index
    %c0_34 = arith.constant 0 : index
    %144 = vector.load %arg13[%143, %c0_33, %c0_34] : memref<8x8x256xf32, #tpu.memory_space<vmem>>, vector<1x8x256xf32>
    %145 = vector.shape_cast %144 : vector<1x8x256xf32> to vector<8x256xf32>
    %146 = arith.truncf %137 : vector<8x64xf32> to vector<8x64xbf16>
    %cst_35 = arith.constant dense<0.000000e+00> : vector<8x256xf32>
    %147 = tpu.matmul %146, %87, %cst_35 {dimension_numbers = #tpu.dot_dimension_numbers<[1], [0], [0], [1], [0, 0, 1, 1], [], []>} : vector<8x64xbf16>, vector<64x256xbf16>, vector<8x256xf32> -> vector<8x256xf32>
    %148 = arith.addf %145, %147 : vector<8x256xf32>
    %149 = vector.extract_strided_slice %148 {offsets = [0, 0], sizes = [8, 192], strides = [1, 1]} : vector<8x256xf32> to vector<8x192xf32>
    %150 = arith.negf %149 : vector<8x192xf32>
    %151 = math.exp %150 : vector<8x192xf32>
    %cst_36 = arith.constant 1.000000e+00 : f32
    %152 = vector.broadcast %cst_36 : f32 to vector<8x192xf32>
    %153 = arith.addf %152, %151 : vector<8x192xf32>
    %154 = arith.divf %152, %153 : vector<8x192xf32>
    %155 = vector.extract_strided_slice %148 {offsets = [0, 192], sizes = [8, 64], strides = [1, 1]} : vector<8x256xf32> to vector<8x64xf32>
    %156 = math.tanh %155 : vector<8x64xf32>
    %157 = vector.extract_strided_slice %154 {offsets = [0, 64], sizes = [8, 64], strides = [1, 1]} : vector<8x192xf32> to vector<8x64xf32>
    %158 = arith.mulf %157, %134 : vector<8x64xf32>
    %159 = vector.extract_strided_slice %154 {offsets = [0, 0], sizes = [8, 64], strides = [1, 1]} : vector<8x192xf32> to vector<8x64xf32>
    %160 = arith.mulf %159, %156 : vector<8x64xf32>
    %161 = arith.addf %158, %160 : vector<8x64xf32>
    %162 = vector.extract_strided_slice %154 {offsets = [0, 128], sizes = [8, 64], strides = [1, 1]} : vector<8x192xf32> to vector<8x64xf32>
    %163 = math.tanh %161 : vector<8x64xf32>
    %164 = arith.mulf %162, %163 : vector<8x64xf32>
    %165 = vector.broadcast %c2_i32_32 : i32 to vector<8x1xi32>
    %166 = arith.cmpi eq, %3, %165 : vector<8x1xi32>
    %167 = vector.shape_cast %166 : vector<8x1xi1> to vector<8x1xi1>
    %168 = vector.broadcast %167 : vector<8x1xi1> to vector<8x64xi1>
    %169 = arith.select %168, %164, %142 : vector<8x64xi1>, vector<8x64xf32>
    %c3_i32_37 = arith.constant 3 : i32
    %170 = arith.index_cast %c3_i32_37 : i32 to index
    %c0_38 = arith.constant 0 : index
    %c0_39 = arith.constant 0 : index
    %171 = vector.load %arg13[%170, %c0_38, %c0_39] : memref<8x8x256xf32, #tpu.memory_space<vmem>>, vector<1x8x256xf32>
    %172 = vector.shape_cast %171 : vector<1x8x256xf32> to vector<8x256xf32>
    %173 = arith.truncf %164 : vector<8x64xf32> to vector<8x64xbf16>
    %cst_40 = arith.constant dense<0.000000e+00> : vector<8x256xf32>
    %174 = tpu.matmul %173, %87, %cst_40 {dimension_numbers = #tpu.dot_dimension_numbers<[1], [0], [0], [1], [0, 0, 1, 1], [], []>} : vector<8x64xbf16>, vector<64x256xbf16>, vector<8x256xf32> -> vector<8x256xf32>
    %175 = arith.addf %172, %174 : vector<8x256xf32>
    %176 = vector.extract_strided_slice %175 {offsets = [0, 0], sizes = [8, 192], strides = [1, 1]} : vector<8x256xf32> to vector<8x192xf32>
    %177 = arith.negf %176 : vector<8x192xf32>
    %178 = math.exp %177 : vector<8x192xf32>
    %cst_41 = arith.constant 1.000000e+00 : f32
    %179 = vector.broadcast %cst_41 : f32 to vector<8x192xf32>
    %180 = arith.addf %179, %178 : vector<8x192xf32>
    %181 = arith.divf %179, %180 : vector<8x192xf32>
    %182 = vector.extract_strided_slice %175 {offsets = [0, 192], sizes = [8, 64], strides = [1, 1]} : vector<8x256xf32> to vector<8x64xf32>
    %183 = math.tanh %182 : vector<8x64xf32>
    %184 = vector.extract_strided_slice %181 {offsets = [0, 64], sizes = [8, 64], strides = [1, 1]} : vector<8x192xf32> to vector<8x64xf32>
    %185 = arith.mulf %184, %161 : vector<8x64xf32>
    %186 = vector.extract_strided_slice %181 {offsets = [0, 0], sizes = [8, 64], strides = [1, 1]} : vector<8x192xf32> to vector<8x64xf32>
    %187 = arith.mulf %186, %183 : vector<8x64xf32>
    %188 = arith.addf %185, %187 : vector<8x64xf32>
    %189 = vector.extract_strided_slice %181 {offsets = [0, 128], sizes = [8, 64], strides = [1, 1]} : vector<8x192xf32> to vector<8x64xf32>
    %190 = math.tanh %188 : vector<8x64xf32>
    %191 = arith.mulf %189, %190 : vector<8x64xf32>
    %192 = vector.broadcast %c3_i32_37 : i32 to vector<8x1xi32>
    %193 = arith.cmpi eq, %3, %192 : vector<8x1xi32>
    %194 = vector.shape_cast %193 : vector<8x1xi1> to vector<8x1xi1>
    %195 = vector.broadcast %194 : vector<8x1xi1> to vector<8x64xi1>
    %196 = arith.select %195, %191, %169 : vector<8x64xi1>, vector<8x64xf32>
    %c4_i32_42 = arith.constant 4 : i32
    %197 = arith.index_cast %c4_i32_42 : i32 to index
    %c0_43 = arith.constant 0 : index
    %c0_44 = arith.constant 0 : index
    %198 = vector.load %arg13[%197, %c0_43, %c0_44] : memref<8x8x256xf32, #tpu.memory_space<vmem>>, vector<1x8x256xf32>
    %199 = vector.shape_cast %198 : vector<1x8x256xf32> to vector<8x256xf32>
    %200 = arith.truncf %191 : vector<8x64xf32> to vector<8x64xbf16>
    %cst_45 = arith.constant dense<0.000000e+00> : vector<8x256xf32>
    %201 = tpu.matmul %200, %87, %cst_45 {dimension_numbers = #tpu.dot_dimension_numbers<[1], [0], [0], [1], [0, 0, 1, 1], [], []>} : vector<8x64xbf16>, vector<64x256xbf16>, vector<8x256xf32> -> vector<8x256xf32>
    %202 = arith.addf %199, %201 : vector<8x256xf32>
    %203 = vector.extract_strided_slice %202 {offsets = [0, 0], sizes = [8, 192], strides = [1, 1]} : vector<8x256xf32> to vector<8x192xf32>
    %204 = arith.negf %203 : vector<8x192xf32>
    %205 = math.exp %204 : vector<8x192xf32>
    %cst_46 = arith.constant 1.000000e+00 : f32
    %206 = vector.broadcast %cst_46 : f32 to vector<8x192xf32>
    %207 = arith.addf %206, %205 : vector<8x192xf32>
    %208 = arith.divf %206, %207 : vector<8x192xf32>
    %209 = vector.extract_strided_slice %202 {offsets = [0, 192], sizes = [8, 64], strides = [1, 1]} : vector<8x256xf32> to vector<8x64xf32>
    %210 = math.tanh %209 : vector<8x64xf32>
    %211 = vector.extract_strided_slice %208 {offsets = [0, 64], sizes = [8, 64], strides = [1, 1]} : vector<8x192xf32> to vector<8x64xf32>
    %212 = arith.mulf %211, %188 : vector<8x64xf32>
    %213 = vector.extract_strided_slice %208 {offsets = [0, 0], sizes = [8, 64], strides = [1, 1]} : vector<8x192xf32> to vector<8x64xf32>
    %214 = arith.mulf %213, %210 : vector<8x64xf32>
    %215 = arith.addf %212, %214 : vector<8x64xf32>
    %216 = vector.extract_strided_slice %208 {offsets = [0, 128], sizes = [8, 64], strides = [1, 1]} : vector<8x192xf32> to vector<8x64xf32>
    %217 = math.tanh %215 : vector<8x64xf32>
    %218 = arith.mulf %216, %217 : vector<8x64xf32>
    %219 = vector.broadcast %c4_i32_42 : i32 to vector<8x1xi32>
    %220 = arith.cmpi eq, %3, %219 : vector<8x1xi32>
    %221 = vector.shape_cast %220 : vector<8x1xi1> to vector<8x1xi1>
    %222 = vector.broadcast %221 : vector<8x1xi1> to vector<8x64xi1>
    %223 = arith.select %222, %218, %196 : vector<8x64xi1>, vector<8x64xf32>
    %c5_i32_47 = arith.constant 5 : i32
    %224 = arith.index_cast %c5_i32_47 : i32 to index
    %c0_48 = arith.constant 0 : index
    %c0_49 = arith.constant 0 : index
    %225 = vector.load %arg13[%224, %c0_48, %c0_49] : memref<8x8x256xf32, #tpu.memory_space<vmem>>, vector<1x8x256xf32>
    %226 = vector.shape_cast %225 : vector<1x8x256xf32> to vector<8x256xf32>
    %227 = arith.truncf %218 : vector<8x64xf32> to vector<8x64xbf16>
    %cst_50 = arith.constant dense<0.000000e+00> : vector<8x256xf32>
    %228 = tpu.matmul %227, %87, %cst_50 {dimension_numbers = #tpu.dot_dimension_numbers<[1], [0], [0], [1], [0, 0, 1, 1], [], []>} : vector<8x64xbf16>, vector<64x256xbf16>, vector<8x256xf32> -> vector<8x256xf32>
    %229 = arith.addf %226, %228 : vector<8x256xf32>
    %230 = vector.extract_strided_slice %229 {offsets = [0, 0], sizes = [8, 192], strides = [1, 1]} : vector<8x256xf32> to vector<8x192xf32>
    %231 = arith.negf %230 : vector<8x192xf32>
    %232 = math.exp %231 : vector<8x192xf32>
    %cst_51 = arith.constant 1.000000e+00 : f32
    %233 = vector.broadcast %cst_51 : f32 to vector<8x192xf32>
    %234 = arith.addf %233, %232 : vector<8x192xf32>
    %235 = arith.divf %233, %234 : vector<8x192xf32>
    %236 = vector.extract_strided_slice %229 {offsets = [0, 192], sizes = [8, 64], strides = [1, 1]} : vector<8x256xf32> to vector<8x64xf32>
    %237 = math.tanh %236 : vector<8x64xf32>
    %238 = vector.extract_strided_slice %235 {offsets = [0, 64], sizes = [8, 64], strides = [1, 1]} : vector<8x192xf32> to vector<8x64xf32>
    %239 = arith.mulf %238, %215 : vector<8x64xf32>
    %240 = vector.extract_strided_slice %235 {offsets = [0, 0], sizes = [8, 64], strides = [1, 1]} : vector<8x192xf32> to vector<8x64xf32>
    %241 = arith.mulf %240, %237 : vector<8x64xf32>
    %242 = arith.addf %239, %241 : vector<8x64xf32>
    %243 = vector.extract_strided_slice %235 {offsets = [0, 128], sizes = [8, 64], strides = [1, 1]} : vector<8x192xf32> to vector<8x64xf32>
    %244 = math.tanh %242 : vector<8x64xf32>
    %245 = arith.mulf %243, %244 : vector<8x64xf32>
    %246 = vector.broadcast %c5_i32_47 : i32 to vector<8x1xi32>
    %247 = arith.cmpi eq, %3, %246 : vector<8x1xi32>
    %248 = vector.shape_cast %247 : vector<8x1xi1> to vector<8x1xi1>
    %249 = vector.broadcast %248 : vector<8x1xi1> to vector<8x64xi1>
    %250 = arith.select %249, %245, %223 : vector<8x64xi1>, vector<8x64xf32>
    %c6_i32_52 = arith.constant 6 : i32
    %251 = arith.index_cast %c6_i32_52 : i32 to index
    %c0_53 = arith.constant 0 : index
    %c0_54 = arith.constant 0 : index
    %252 = vector.load %arg13[%251, %c0_53, %c0_54] : memref<8x8x256xf32, #tpu.memory_space<vmem>>, vector<1x8x256xf32>
    %253 = vector.shape_cast %252 : vector<1x8x256xf32> to vector<8x256xf32>
    %254 = arith.truncf %245 : vector<8x64xf32> to vector<8x64xbf16>
    %cst_55 = arith.constant dense<0.000000e+00> : vector<8x256xf32>
    %255 = tpu.matmul %254, %87, %cst_55 {dimension_numbers = #tpu.dot_dimension_numbers<[1], [0], [0], [1], [0, 0, 1, 1], [], []>} : vector<8x64xbf16>, vector<64x256xbf16>, vector<8x256xf32> -> vector<8x256xf32>
    %256 = arith.addf %253, %255 : vector<8x256xf32>
    %257 = vector.extract_strided_slice %256 {offsets = [0, 0], sizes = [8, 192], strides = [1, 1]} : vector<8x256xf32> to vector<8x192xf32>
    %258 = arith.negf %257 : vector<8x192xf32>
    %259 = math.exp %258 : vector<8x192xf32>
    %cst_56 = arith.constant 1.000000e+00 : f32
    %260 = vector.broadcast %cst_56 : f32 to vector<8x192xf32>
    %261 = arith.addf %260, %259 : vector<8x192xf32>
    %262 = arith.divf %260, %261 : vector<8x192xf32>
    %263 = vector.extract_strided_slice %256 {offsets = [0, 192], sizes = [8, 64], strides = [1, 1]} : vector<8x256xf32> to vector<8x64xf32>
    %264 = math.tanh %263 : vector<8x64xf32>
    %265 = vector.extract_strided_slice %262 {offsets = [0, 64], sizes = [8, 64], strides = [1, 1]} : vector<8x192xf32> to vector<8x64xf32>
    %266 = arith.mulf %265, %242 : vector<8x64xf32>
    %267 = vector.extract_strided_slice %262 {offsets = [0, 0], sizes = [8, 64], strides = [1, 1]} : vector<8x192xf32> to vector<8x64xf32>
    %268 = arith.mulf %267, %264 : vector<8x64xf32>
    %269 = arith.addf %266, %268 : vector<8x64xf32>
    %270 = vector.extract_strided_slice %262 {offsets = [0, 128], sizes = [8, 64], strides = [1, 1]} : vector<8x192xf32> to vector<8x64xf32>
    %271 = math.tanh %269 : vector<8x64xf32>
    %272 = arith.mulf %270, %271 : vector<8x64xf32>
    %273 = vector.broadcast %c6_i32_52 : i32 to vector<8x1xi32>
    %274 = arith.cmpi eq, %3, %273 : vector<8x1xi32>
    %275 = vector.shape_cast %274 : vector<8x1xi1> to vector<8x1xi1>
    %276 = vector.broadcast %275 : vector<8x1xi1> to vector<8x64xi1>
    %277 = arith.select %276, %272, %250 : vector<8x64xi1>, vector<8x64xf32>
    %c7_i32_57 = arith.constant 7 : i32
    %278 = arith.index_cast %c7_i32_57 : i32 to index
    %c0_58 = arith.constant 0 : index
    %c0_59 = arith.constant 0 : index
    %279 = vector.load %arg13[%278, %c0_58, %c0_59] : memref<8x8x256xf32, #tpu.memory_space<vmem>>, vector<1x8x256xf32>
    %280 = vector.shape_cast %279 : vector<1x8x256xf32> to vector<8x256xf32>
    %281 = arith.truncf %272 : vector<8x64xf32> to vector<8x64xbf16>
    %cst_60 = arith.constant dense<0.000000e+00> : vector<8x256xf32>
    %282 = tpu.matmul %281, %87, %cst_60 {dimension_numbers = #tpu.dot_dimension_numbers<[1], [0], [0], [1], [0, 0, 1, 1], [], []>} : vector<8x64xbf16>, vector<64x256xbf16>, vector<8x256xf32> -> vector<8x256xf32>
    %283 = arith.addf %280, %282 : vector<8x256xf32>
    %284 = vector.extract_strided_slice %283 {offsets = [0, 0], sizes = [8, 192], strides = [1, 1]} : vector<8x256xf32> to vector<8x192xf32>
    %285 = arith.negf %284 : vector<8x192xf32>
    %286 = math.exp %285 : vector<8x192xf32>
    %cst_61 = arith.constant 1.000000e+00 : f32
    %287 = vector.broadcast %cst_61 : f32 to vector<8x192xf32>
    %288 = arith.addf %287, %286 : vector<8x192xf32>
    %289 = arith.divf %287, %288 : vector<8x192xf32>
    %290 = vector.extract_strided_slice %283 {offsets = [0, 192], sizes = [8, 64], strides = [1, 1]} : vector<8x256xf32> to vector<8x64xf32>
    %291 = math.tanh %290 : vector<8x64xf32>
    %292 = vector.extract_strided_slice %289 {offsets = [0, 64], sizes = [8, 64], strides = [1, 1]} : vector<8x192xf32> to vector<8x64xf32>
    %293 = arith.mulf %292, %269 : vector<8x64xf32>
    %294 = vector.extract_strided_slice %289 {offsets = [0, 0], sizes = [8, 64], strides = [1, 1]} : vector<8x192xf32> to vector<8x64xf32>
    %295 = arith.mulf %294, %291 : vector<8x64xf32>
    %296 = arith.addf %293, %295 : vector<8x64xf32>
    %297 = vector.extract_strided_slice %289 {offsets = [0, 128], sizes = [8, 64], strides = [1, 1]} : vector<8x192xf32> to vector<8x64xf32>
    %298 = math.tanh %296 : vector<8x64xf32>
    %299 = arith.mulf %297, %298 : vector<8x64xf32>
    %300 = vector.broadcast %c7_i32_57 : i32 to vector<8x1xi32>
    %301 = arith.cmpi eq, %3, %300 : vector<8x1xi32>
    %302 = vector.shape_cast %301 : vector<8x1xi1> to vector<8x1xi1>
    %303 = vector.broadcast %302 : vector<8x1xi1> to vector<8x64xi1>
    %304 = arith.select %303, %299, %277 : vector<8x64xi1>, vector<8x64xf32>
    %c8_i32 = arith.constant 8 : i32
    %305 = tpu.concatenate %304, %86 in 1 : vector<8x64xf32>, vector<8x64xf32> -> vector<8x128xf32>
    %306 = arith.truncf %305 : vector<8x128xf32> to vector<8x128xbf16>
    %c0_62 = arith.constant 0 : index
    %c0_63 = arith.constant 0 : index
    %307 = vector.load %arg8[%c0_62, %c0_63] : memref<128x128xbf16, #tpu.memory_space<vmem>>, vector<128x128xbf16>
    %cst_64 = arith.constant dense<0.000000e+00> : vector<8x128xf32>
    %308 = tpu.matmul %306, %307, %cst_64 {dimension_numbers = #tpu.dot_dimension_numbers<[1], [0], [0], [1], [0, 0, 1, 1], [], []>} : vector<8x128xbf16>, vector<128x128xbf16>, vector<8x128xf32> -> vector<8x128xf32>
    %c0_65 = arith.constant 0 : index
    %c0_66 = arith.constant 0 : index
    %309 = vector.load %arg9[%c0_65, %c0_66] : memref<1x128xf32, #tpu.memory_space<vmem>>, vector<1x128xf32>
    %310 = vector.broadcast %309 : vector<1x128xf32> to vector<8x128xf32>
    %311 = arith.addf %308, %310 : vector<8x128xf32>
    %cst_67 = arith.constant 0.000000e+00 : f32
    %312 = vector.broadcast %cst_67 : f32 to vector<8x128xf32>
    %313 = arith.maximumf %311, %312 : vector<8x128xf32>
    %c0_68 = arith.constant 0 : index
    %c0_69 = arith.constant 0 : index
    %314 = vector.load %arg10[%c0_68, %c0_69] : memref<1x128xf32, #tpu.memory_space<vmem>>, vector<1x128xf32>
    %315 = vector.broadcast %314 : vector<1x128xf32> to vector<8x128xf32>
    %316 = arith.mulf %313, %315 : vector<8x128xf32>
    %cst_70 = arith.constant dense<0.000000e+00> : vector<8xf32>
    %317 = vector.multi_reduction <add>, %316, %cst_70 [1] : vector<8x128xf32> to vector<8xf32>
    %318 = vector.shape_cast %317 : vector<8xf32> to vector<1x8xf32>
    %c0_71 = arith.constant 0 : index
    %c0_72 = arith.constant 0 : index
    %319 = vector.load %arg11[%c0_71, %c0_72] : memref<1x1xf32, #tpu.memory_space<vmem>>, vector<1x1xf32>
    %320 = vector.broadcast %319 : vector<1x1xf32> to vector<1x8xf32>
    %321 = arith.addf %318, %320 : vector<1x8xf32>
    %c0_73 = arith.constant 0 : index
    %c0_74 = arith.constant 0 : index
    %322 = vector.load %arg12[%c0_73, %c0_74] : memref<1x8xf32, #tpu.memory_space<vmem>>, vector<1x8xf32>
    tpu.vector_store %arg12[%c0_73, %c0_74], %321 {strides = array<i32>} : memref<1x8xf32, #tpu.memory_space<vmem>>, vector<1x8xf32>,
    return
  }
  func.func @transform_0(%arg0: i32) -> (i32, i32, i32) {
    %c0_i32 = arith.constant 0 : i32
    %c0_i32_0 = arith.constant 0 : i32
    %c0_i32_1 = arith.constant 0 : i32
    return %c0_i32, %arg0, %c0_i32_0 : i32, i32, i32
  }
  func.func @transform_1(%arg0: i32) -> (i32, i32) {
    %c0_i32 = arith.constant 0 : i32
    %c0_i32_0 = arith.constant 0 : i32
    return %arg0, %c0_i32 : i32, i32
  }
  func.func @transform_2(%arg0: i32) -> (i32, i32) {
    %c0_i32 = arith.constant 0 : i32
    %c0_i32_0 = arith.constant 0 : i32
    %c0_i32_1 = arith.constant 0 : i32
    return %c0_i32, %c0_i32_0 : i32, i32
  }
  func.func @transform_3(%arg0: i32) -> (i32, i32) {
    %c0_i32 = arith.constant 0 : i32
    %c0_i32_0 = arith.constant 0 : i32
    %c0_i32_1 = arith.constant 0 : i32
    return %c0_i32, %c0_i32_0 : i32, i32
  }
  func.func @transform_4(%arg0: i32) -> (i32, i32) {
    %c0_i32 = arith.constant 0 : i32
    %c0_i32_0 = arith.constant 0 : i32
    %c0_i32_1 = arith.constant 0 : i32
    return %c0_i32, %c0_i32_0 : i32, i32
  }
  func.func @transform_5(%arg0: i32) -> (i32, i32) {
    %c0_i32 = arith.constant 0 : i32
    %c0_i32_0 = arith.constant 0 : i32
    %c0_i32_1 = arith.constant 0 : i32
    return %c0_i32, %c0_i32_0 : i32, i32
  }
  func.func @transform_6(%arg0: i32) -> (i32, i32) {
    %c0_i32 = arith.constant 0 : i32
    %c0_i32_0 = arith.constant 0 : i32
    %c0_i32_1 = arith.constant 0 : i32
    return %c0_i32, %c0_i32_0 : i32, i32
  }
  func.func @transform_7(%arg0: i32) -> (i32, i32) {
    %c0_i32 = arith.constant 0 : i32
    %c0_i32_0 = arith.constant 0 : i32
    %c0_i32_1 = arith.constant 0 : i32
    return %c0_i32, %c0_i32_0 : i32, i32
  }
  func.func @transform_8(%arg0: i32) -> (i32, i32) {
    %c0_i32 = arith.constant 0 : i32
    %c0_i32_0 = arith.constant 0 : i32
    %c0_i32_1 = arith.constant 0 : i32
    return %c0_i32, %c0_i32_0 : i32, i32
  }
  func.func @transform_9(%arg0: i32) -> (i32, i32) {
    %c0_i32 = arith.constant 0 : i32
    %c0_i32_0 = arith.constant 0 : i32
    %c0_i32_1 = arith.constant 0 : i32
    return %c0_i32, %c0_i32_0 : i32, i32
  }
  func.func @transform_10(%arg0: i32) -> (i32, i32) {
    %c0_i32 = arith.constant 0 : i32
    %c0_i32_0 = arith.constant 0 : i32
    %c0_i32_1 = arith.constant 0 : i32
    return %c0_i32, %c0_i32_0 : i32, i32
  }
  func.func @transform_11(%arg0: i32) -> (i32, i32) {
    %c0_i32 = arith.constant 0 : i32
    %c0_i32_0 = arith.constant 0 : i32
    return %c0_i32, %arg0 : i32, i32
  }
}

</mosaic_0001>

<bundles_post_ra>
// kernel: outcome_predictor_forward.1
= control target key start
LH: loop header
LB: loop body
LE: loop exit
PB: predicated region body
PF: predicated region fallthrough
CT: control target
= control target key end

     0   :  { %v1939_v0 = vmov 0   ;;  %vm208_vm6 = vcmask 1041408   ;;  %vm195_vm7 = vcmask 31744   ;;  %s2730_s1 = inlined_call_operand.vmem [shape: s32[8,1], index: 1, kind: input, shape index: {}]   ;;  %s2731_s2 = inlined_call_operand.vmem [shape: bf16[132,256], index: 2, kind: input, shape index: {}]   ;;  %s2732_s0 = inlined_call_operand.vmem [shape: bf16[8,8,132], index: 0, kind: input, shape index: {}]   ;;  %s2733_s5 = inlined_call_operand.vmem [shape: bf16[132,192], index: 5, kind: input, shape index: {}]   ;;  %s2734_s4 = inlined_call_operand.vmem [shape: bf16[64,256], index: 4, kind: input, shape index: {}]   ;;  %s2735_s3 = inlined_call_operand.vmem [shape: f32[1,256], index: 3, kind: input, shape index: {}]   ;;  %s2736_s6 = inlined_call_operand.vmem [shape: f32[1,192], index: 6, kind: input, shape index: {}]   ;;  %s2737_s10 = inlined_call_operand.<no memory space> [shape: f32[1,1], index: 10, kind: input, shape index: {}]   ;;  %s2738_s7 = inlined_call_operand.vmem [shape: bf16[128,128], index: 7, kind: input, shape index: {}]   ;;  %s2739_s8 = inlined_call_operand.vmem [shape: f32[1,128], index: 8, kind: input, shape index: {}]   ;;  %s2740_s9 = inlined_call_operand.vmem [shape: f32[1,128], index: 9, kind: input, shape index: {}]   ;;  %s2741_s11 = inlined_call_operand.vmem [shape: f32[1,8], index: 11, kind: output, shape index: {}]  }
   0x1   :  { %1831 = vset.pattern.permute.xlu1 %v1939_v0  ;;  %1830 = vset.pattern.permute.xlu0 %v1939_v0  ;;  %v49_v1 = vld [vmem:[%s2730_s1] sm:$0xff]  ;;  %v1794_v2 = vld [vmem:[%s2731_s2 + $0x74] sm:$0xf]  ;;  %v1599_v3 = vld [vmem:[%s2731_s2 + $0x78] sm:$0xf0] }
   0x2   :  { %v1506_v4 = vadd.s32 4294967295, %v49_v1  ;;  %1832 = vset.pattern.permute.xlu2 %v1939_v0  ;;  %v1602_v5 = vor.u32 %v1794_v2, %v1599_v3  ;;  %v1792_v6 = vld [vmem:[%s2731_s2 + $0x64] sm:$0xf]  ;;  %v1591_v7 = vld [vmem:[%s2731_s2 + $0x68] sm:$0xf0] }
   0x3   :  { %v1594_v8 = vor.u32 %v1792_v6, %v1591_v7  ;;  %v1790_v11 = vld [vmem:[%s2731_s2 + $0x54] sm:$0xf]  ;;  %v1583_v12 = vld [vmem:[%s2731_s2 + $0x58] sm:$0xf0]  ;;  %v1788_v15 = vld [vmem:[%s2731_s2 + $0x44] sm:$0xf] }
   0x4   :  { %vm363_vm0 = vcmp.eq.s32.totalorder %v1506_v4, 2  ;;  %vm347_vm1 = vcmp.eq.s32.totalorder %v1506_v4, 0  ;;  %273 = vmatpush.bf16.msra.mxu2 %v1602_v5  ;;  %vm379_vm2 = vcmp.eq.s32.totalorder %v1506_v4, 4  ;;  %vm371_vm3 = vcmp.eq.s32.totalorder %v1506_v4, 3  ;;  %v1575_v16 = vld [vmem:[%s2731_s2 + $0x48] sm:$0xf0] }
   0x5   :  { %v364_v9 = vsel %vm363_vm0, 1, %v1939_v0  ;;  %v348_v10 = vsel %vm347_vm1, 1, %v1939_v0  ;;  %v380_v13 = vsel %vm379_vm2, 1, %v1939_v0  ;;  %vm355_vm4 = vcmp.eq.s32.totalorder %v1506_v4, 1  ;;  %v67_v17 = vld [vmem:[%s2731_s2 + $0x80] sm:$0x33] }
   0x6   :  { %366 = vperm.xlu1 %1831, %v364_v9   ;;  %350 = vperm.xlu0 %1830, %v348_v10   ;;  %v1586_v14 = vor.u32 %v1790_v11, %v1583_v12  ;;  %vm387_vm5 = vcmp.eq.s32.totalorder %v1506_v4, 5  ;;  %v160_v18 = vunpack.c.h.b16 %v67_v17  ;;  %v159_v19 = vunpack.c.l.b16 %v67_v17  ;;  %v1772_v22 = vld [vmem:[%s2732_s0 + $0x4] sm:$0xf]  ;;  %v1511_v23 = vld [vmem:[%s2732_s0 + $0x8] sm:$0xf0] }
   0x7   :  { %382 = vperm.xlu2 %1832, %v380_v13   ;;  %v372_v20 = vsel %vm371_vm3, 1, %v1939_v0  ;;  %v356_v21 = vsel %vm355_vm4, 1, %v1939_v0  ;;  %v1578_v24 = vor.u32 %v1788_v15, %v1575_v16  ;;  %v388_v27 = vsel %vm387_vm5, 1, %v1939_v0  ;;  %v1786_v28 = vld [vmem:[%s2731_s2 + $0x34] sm:$0xf] }
   0x8   :  { %274 = vmatpush.bf16.msra.mxu2 %v1594_v8  ;;  %v178_v25 = vpack.c.b16 %v160_v18, %v160_v18  ;;  %v177_v26 = vpack.c.b16 %v159_v19, %v159_v19  ;;  %v1567_v29 = vld [vmem:[%s2731_s2 + $0x38] sm:$0xf0]  ;;  %v1514_v31 = vor.u32 %v1772_v22, %v1511_v23  ;;  %vm403_vm8 = vcmp.eq.s32.totalorder %v1506_v4, 7  ;;  %v1784_v34 = vld [vmem:[%s2731_s2 + $0x24] sm:$0xf] }
   0x9   :  { %vm395_vm9 = vcmp.eq.s32.totalorder %v1506_v4, 6  ;;  %v1570_v33 = vor.u32 %v1786_v28, %v1567_v29  ;;  %v1559_v35 = vld [vmem:[%s2731_s2 + $0x28] sm:$0xf0]  ;;  %v404_v36 = vsel %vm403_vm8, 1, %v1939_v0  ;;  %v1782_v39 = vld [vmem:[%s2731_s2 + $0x14] sm:$0xf] }
   0xa   :  { %v213_v30 = vsel %vm208_vm6, %v178_v25, 0  ;;  %v210_v32 = vsel %vm208_vm6, %v177_v26, 0  ;;  %v396_v37 = vsel %vm395_vm9, 1, %v1939_v0  ;;  %v1562_v38 = vor.u32 %v1784_v34, %v1559_v35  ;;  %v1551_v40 = vld [vmem:[%s2731_s2 + $0x18] sm:$0xf0] }
   0xb   :  { %309 = vmatpush.bf16.msra.mxu3 %v213_v30  ;;  %251 = vmatpush.bf16.msra.mxu1 %v210_v32  ;;  %v1554_v41 = vor.u32 %v1782_v39, %v1551_v40  ;;  %v1780_v42 = vld [vmem:[%s2731_s2 + $0x4] sm:$0xf]  ;;  %v1543_v43 = vld [vmem:[%s2731_s2 + $0x8] sm:$0xf0]  ;;  %v1810_v44 = vld [vmem:[%s2733_s5 + $0x74] sm:$0xf] }
   0xc   :  { %275 = vmatpush.bf16.msra.mxu2 %v1586_v14  ;;  %v1671_v45 = vld [vmem:[%s2733_s5 + $0x78] sm:$0xf0]  ;;  %v1774_v46 = vld [vmem:[%s2732_s0 + $0x14] sm:$0xf]  ;;  %v1546_v48 = vor.u32 %v1780_v42, %v1543_v43  ;;  %v1509_v49 = vld [vmem:[%s2732_s0] sm:$0xf] }
   0xd   :  { %v1519_v47 = vld [vmem:[%s2732_s0 + $0x18] sm:$0xf0]  ;;  %v1773_v50 = vld [vmem:[%s2732_s0 + $0x4] sm:$0xf0]  ;;  %v1674_v51 = vor.u32 %v1810_v44, %v1671_v45  ;;  %v1808_v52 = vld [vmem:[%s2733_s5 + $0x64] sm:$0xf] }
   0xe   :  { %374 = vperm.xlu1 %1831, %v372_v20   ;;  %358 = vperm.xlu0 %1830, %v356_v21   ;;  %v1663_v53 = vld [vmem:[%s2733_s5 + $0x68] sm:$0xf0]  ;;  %v1522_v54 = vor.u32 %v1774_v46, %v1519_v47  ;;  %v2100_v55 = vor.u32 %v1773_v50, %v1509_v49  ;;  %v1806_v57 = vld [vmem:[%s2733_s5 + $0x54] sm:$0xf]  ;;  %v1655_v58 = vld [vmem:[%s2733_s5 + $0x58] sm:$0xf0] }
   0xf   :  { %390 = vperm.xlu2 %1832, %v388_v27   ;;  %1607 = vmatmul.msk.bf16.vlgmr.msra.gmra.mxu3 %vm195_vm7, %v1514_v31  ;;  %v1666_v56 = vor.u32 %v1808_v52, %v1663_v53  ;;  %v1658_v59 = vor.u32 %v1806_v57, %v1655_v58  ;;  %v1669_v60 = vld [vmem:[%s2733_s5 + $0x70] sm:$0xf]  ;;  %v1811_v61 = vld [vmem:[%s2733_s5 + $0x74] sm:$0xf0]  ;;  %v1661_v62 = vld [vmem:[%s2733_s5 + $0x60] sm:$0xf] }
  0x10   :  { %276 = vmatpush.bf16.msra.mxu2 %v1578_v24  ;;  %1603 = vmatmul.msk.bf16.vlgmr.msra.gmra.mxu1 %vm195_vm7, %v1514_v31  ;;  %v1804_v63 = vld [vmem:[%s2733_s5 + $0x44] sm:$0xf]  ;;  %v1647_v1 = vld [vmem:[%s2733_s5 + $0x48] sm:$0xf0]  ;;  %v1670_v2 = vor.u32 %v1811_v61, %v1669_v60  ;;  %v1809_v3 = vld [vmem:[%s2733_s5 + $0x64] sm:$0xf0] }
  0x11   :  { %v1662_v4 = vor.u32 %v1809_v3, %v1661_v62  ;;  %v1650_v5 = vor.u32 %v1804_v63, %v1647_v1  ;;  %v1802_v6 = vld [vmem:[%s2733_s5 + $0x34] sm:$0xf]  ;;  %v1639_v7 = vld [vmem:[%s2733_s5 + $0x38] sm:$0xf0]  ;;  %v1776_v8 = vld [vmem:[%s2732_s0 + $0x24] sm:$0xf] }
  0x12   :  { %534 = vmatpush.bf16.msrb.mxu1 %v1670_v2  ;;  %v1527_v9 = vld [vmem:[%s2732_s0 + $0x28] sm:$0xf0]  ;;  %v1517_v10 = vld [vmem:[%s2732_s0 + $0x10] sm:$0xf]  ;;  %v1775_v11 = vld [vmem:[%s2732_s0 + $0x14] sm:$0xf0]  ;;  %v1642_v12 = vor.u32 %v1802_v6, %v1639_v7 }
  0x13   :  { %v1530_v13 = vor.u32 %v1776_v8, %v1527_v9  ;;  %v2147_v14 = vor.u32 %v1775_v11, %v1517_v10  ;;  %v1525_v15 = vld [vmem:[%s2732_s0 + $0x20] sm:$0xf]  ;;  %v1777_v16 = vld [vmem:[%s2732_s0 + $0x24] sm:$0xf0]  ;;  %v1533_v18 = vld [vmem:[%s2732_s0 + $0x30] sm:$0xf] }
  0x14   :  { %277 = vmatpush.bf16.msra.mxu2 %v1570_v33  ;;  %v2158_v17 = vor.u32 %v1777_v16, %v1525_v15  ;;  %v1779_v19 = vld [vmem:[%s2732_s0 + $0x34] sm:$0xf0]  ;;  %v1653_v21 = vld [vmem:[%s2733_s5 + $0x50] sm:$0xf]  ;;  %v1778_v24 = vld [vmem:[%s2732_s0 + $0x34] sm:$0xf] }
  0x15   :  { %v2167_v20 = vor.u32 %v1779_v19, %v1533_v18  ;;  %v1807_v22 = vld [vmem:[%s2733_s5 + $0x54] sm:$0xf0]  ;;  %v1535_v25 = vld [vmem:[%s2732_s0 + $0x38] sm:$0xf0]  ;;  %v1800_v27 = vld [vmem:[%s2733_s5 + $0x24] sm:$0xf] }
  0x16   :  { %406 = vperm.xlu1 %1831, %v404_v36   ;;  %398 = vperm.xlu0 %1830, %v396_v37   ;;  %v1654_v23 = vor.u32 %v1807_v22, %v1653_v21  ;;  %v1538_v26 = vor.u32 %v1778_v24, %v1535_v25  ;;  %v1631_v28 = vld [vmem:[%s2733_s5 + $0x28] sm:$0xf0]  ;;  %v1645_v29 = vld [vmem:[%s2733_s5 + $0x40] sm:$0xf]  ;;  %v1805_v31 = vld [vmem:[%s2733_s5 + $0x44] sm:$0xf0] }
  0x17   :  { %535 = vmatpush.bf16.msrb.mxu1 %v1662_v4  ;;  %v1634_v30 = vor.u32 %v1800_v27, %v1631_v28  ;;  %v1646_v32 = vor.u32 %v1805_v31, %v1645_v29  ;;  %v1637_v33 = vld [vmem:[%s2733_s5 + $0x30] sm:$0xf]  ;;  %v1803_v34 = vld [vmem:[%s2733_s5 + $0x34] sm:$0xf0]  ;;  %v1629_v36 = vld [vmem:[%s2733_s5 + $0x20] sm:$0xf] }
  0x18   :  { %278 = vmatpush.bf16.msra.mxu2 %v1562_v38  ;;  %v1638_v35 = vor.u32 %v1803_v34, %v1637_v33  ;;  %v1801_v37 = vld [vmem:[%s2733_s5 + $0x24] sm:$0xf0]  ;;  %v1798_v39 = vld [vmem:[%s2733_s5 + $0x14] sm:$0xf]  ;;  %v1623_v40 = vld [vmem:[%s2733_s5 + $0x18] sm:$0xf0] }
  0x19   :  { %v1630_v38 = vor.u32 %v1801_v37, %v1629_v36  ;;  %v1621_v42 = vld [vmem:[%s2733_s5 + $0x10] sm:$0xf]  ;;  %v1799_v43 = vld [vmem:[%s2733_s5 + $0x14] sm:$0xf0]  ;;  %v427_v45 = vld [vmem:[%s2733_s5 + $0x80] sm:$0x33] }
  0x1a   :  { %v1622_v44 = vor.u32 %v1799_v43, %v1621_v42  ;;  %v489_v46 = vunpack.c.l.b16 %v427_v45  ;;  %v1796_v47 = vld [vmem:[%s2733_s5 + $0x4] sm:$0xf]  ;;  %v1797_v52 = vld [vmem:[%s2733_s5 + $0x4] sm:$0xf0]  ;;  %v1818_v57 = vld [vmem:[%s2734_s4 + $0x34] sm:$0xf] }
  0x1b   :  { %536 = vmatpush.bf16.msrb.mxu1 %v1654_v23  ;;  %v1706_v58 = vld [vmem:[%s2734_s4 + $0x38] sm:$0xf0]  ;;  %v1816_v60 = vld [vmem:[%s2734_s4 + $0x24] sm:$0xf]  ;;  %v1698_v61 = vld [vmem:[%s2734_s4 + $0x28] sm:$0xf0] }
  0x1c   :  { %279 = vmatpush.bf16.msra.mxu2 %v1554_v41  ;;  %v1626_v41 = vor.u32 %v1798_v39, %v1623_v40  ;;  %v507_v49 = vpack.c.b16 %v489_v46, %v489_v46  ;;  %v2251_v63 = vor.u32 %v1816_v60, %v1698_v61  ;;  %v1814_v1 = vld [vmem:[%s2734_s4 + $0x14] sm:$0xf]  ;;  %v1690_v2 = vld [vmem:[%s2734_s4 + $0x18] sm:$0xf0]  ;;  %v1812_v8 = vld [vmem:[%s2734_s4 + $0x4] sm:$0xf] }
  0x1d   :  { %v2265_v6 = vor.u32 %v1814_v1, %v1690_v2  ;;  %v1682_v9 = vld [vmem:[%s2734_s4 + $0x8] sm:$0xf0]  ;;  %v41_v11 = vld [vmem:[%s2732_s0] sm:$0xff]  ;;  %v43_v18 = vld [vmem:[%s2732_s0 + $0x10] sm:$0xff] }
  0x1e   :  { %v2276_v10 = vor.u32 %v1812_v8, %v1682_v9  ;;  %v42_v16 = vld [vmem:[%s2732_s0 + $0x8] sm:$0xff]  ;;  %v44_v19 = vld [vmem:[%s2732_s0 + $0x18] sm:$0xff]  ;;  %v1597_v23 = vld [vmem:[%s2731_s2 + $0x70] sm:$0xf] }
  0x1f   :  { %1608 = vmatmul.msk.bf16.gmra.mxu3 %vm195_vm7, %v1522_v54  ;;  %537 = vmatpush.bf16.msrb.mxu1 %v1646_v32  ;;  %v1795_v24 = vld [vmem:[%s2731_s2 + $0x74] sm:$0xf0]  ;;  %v1589_v27 = vld [vmem:[%s2731_s2 + $0x60] sm:$0xf]  ;;  %v1793_v28 = vld [vmem:[%s2731_s2 + $0x64] sm:$0xf0] }
  0x20   :  { %280 = vmatpush.bf16.msra.mxu2 %v1546_v48  ;;  %1604 = vmatmul.msk.bf16.gmra.mxu1 %vm195_vm7, %v1522_v54  ;;  %v1615_v48 = vld [vmem:[%s2733_s5 + $0x8] sm:$0xf0]  ;;  %v529_v54 = vsel %vm208_vm6, %v507_v49, 0  ;;  %v1590_v32 = vor.u32 %v1793_v28, %v1589_v27  ;;  %v1704_v33 = vld [vmem:[%s2734_s4 + $0x30] sm:$0xf]  ;;  %v48_v46 = vld [vmem:[%s2732_s0 + $0x38] sm:$0xff] }
  0x21   :  { %v1618_v50 = vor.u32 %v1796_v47, %v1615_v48  ;;  %554 = vmatpush.bf16.msrb.mxu3 %v529_v54  ;;  %v1819_v34 = vld [vmem:[%s2734_s4 + $0x34] sm:$0xf0]  ;;  %v1581_v36 = vld [vmem:[%s2731_s2 + $0x50] sm:$0xf]  ;;  %v1789_v54 = vld [vmem:[%s2731_s2 + $0x44] sm:$0xf0] }
  0x22   :  { %v1791_v37 = vld [vmem:[%s2731_s2 + $0x54] sm:$0xf0]  ;;  %v47_v42 = vld [vmem:[%s2732_s0 + $0x30] sm:$0xff]  ;;  %v1680_v8 = vld [vmem:[%s2734_s4] sm:$0xf] }
  0x23   :  { %281 = vmatmul.bf16.vlgmr.msra.gmra.mxu2 %v2100_v55  ;;  %538 = vmatpush.bf16.msrb.mxu1 %v1638_v35  ;;  %v1582_v47 = vor.u32 %v1791_v37, %v1581_v36  ;;  %v1565_v2 = vld [vmem:[%s2731_s2 + $0x30] sm:$0xf]  ;;  %v1813_v9 = vld [vmem:[%s2734_s4 + $0x4] sm:$0xf0] }
  0x24   :  { %560 = vmatpush.bf16.msrb.mxu2 %v1674_v51  ;;  %v1613_v51 = vld [vmem:[%s2733_s5] sm:$0xf]  ;;  %v1781_v27 = vld [vmem:[%s2731_s2 + $0x4] sm:$0xf0] }
  0x25   :  { %v1614_v53 = vor.u32 %v1797_v52, %v1613_v51  ;;  %v1815_v51 = vld [vmem:[%s2734_s4 + $0x14] sm:$0xf0] }
  0x27   :  { %539 = vmatpush.bf16.msrb.mxu1 %v1630_v38  ;;  %v2355_v38 = vor.u32 %v1819_v34, %v1704_v33 }
  0x28   :  { %561 = vmatpush.bf16.msrb.mxu2 %v1666_v56  ;;  %v490_v56 = vunpack.c.h.b16 %v427_v45  ;;  %v1817_v45 = vld [vmem:[%s2734_s4 + $0x24] sm:$0xf0] }
  0x29   :  { %671 = vmatpush.bf16.msra.mxu3 %v2355_v38 }
  0x2a   :  { %v508_v62 = vpack.c.b16 %v490_v56, %v490_v56 }
  0x2b   :  { %540 = vmatpush.bf16.msrb.mxu1 %v1622_v44  ;;  %v1696_v44 = vld [vmem:[%s2734_s4 + $0x20] sm:$0xf] }
  0x2c   :  { %562 = vmatpush.bf16.msrb.mxu2 %v1658_v59  ;;  %v2242_v59 = vor.u32 %v1818_v57, %v1706_v58  ;;  %v532_v3 = vsel %vm208_vm6, %v508_v62, 0  ;;  %v2387_v48 = vor.u32 %v1817_v45, %v1696_v44 }
  0x2e   :  { %672 = vmatpush.bf16.msra.mxu3 %v2387_v48 }
  0x2f   :  { %1609 = vmatmul.msk.bf16.gmra.mxu3 %vm195_vm7, %v1530_v13  ;;  %541 = vmatpush.bf16.msrb.mxu1 %v1614_v53  ;;  %v1573_v53 = vld [vmem:[%s2731_s2 + $0x40] sm:$0xf] }
  0x30   :  { %563 = vmatpush.bf16.msrb.mxu2 %v1650_v5  ;;  %1605 = vmatmul.msk.bf16.gmra.mxu1 %vm195_vm7, %v1530_v13  ;;  %v1574_v61 = vor.u32 %v1789_v54, %v1573_v53 }
  0x33   :  { %286 = vmatmul.bf16.gmra.mxu2 %v2147_v14  ;;  %580 = vmatpush.bf16.msra.mxu1 %v532_v3  ;;  %v1787_v3 = vld [vmem:[%s2731_s2 + $0x34] sm:$0xf0] }
  0x34   :  { %564 = vmatpush.bf16.msrb.mxu2 %v1642_v12  ;;  %v1566_v12 = vor.u32 %v1787_v3, %v1565_v2 }
  0x38   :  { %565 = vmatpush.bf16.msrb.mxu2 %v1634_v30  ;;  %v45_v30 = vld [vmem:[%s2732_s0 + $0x20] sm:$0xff] }
  0x3c   :  { %566 = vmatpush.bf16.msrb.mxu2 %v1626_v41  ;;  %v46_v41 = vld [vmem:[%s2732_s0 + $0x28] sm:$0xff] }
  0x3f   :  { %1610 = vmatmul.msk.bf16.gmra.mxu3 %vm195_vm7, %v1538_v26 }
  0x40   :  { %1606 = vmatmul.msk.bf16.gmra.mxu1 %vm195_vm7, %v1538_v26  ;;  %567 = vmatpush.bf16.msrb.mxu2 %v1618_v50  ;;  %v1598_v26 = vor.u32 %v1795_v24, %v1597_v23  ;;  %v1688_v50 = vld [vmem:[%s2734_s4 + $0x10] sm:$0xf]  ;;  %v1783_v23 = vld [vmem:[%s2731_s2 + $0x14] sm:$0xf0] }
  0x41   :  { %v2405_v57 = vor.u32 %v1815_v51, %v1688_v50 }
  0x42   :  { %215 = vmatpush.bf16.msra.mxu0 %v1598_v26  ;;  %v1541_v26 = vld [vmem:[%s2731_s2] sm:$0xf] }
  0x43   :  { %291 = vmatmul.bf16.gmra.mxu2 %v2158_v17  ;;  %673 = vmatpush.bf16.msra.mxu3 %v2405_v57  ;;  %v1542_v28 = vor.u32 %v1781_v27, %v1541_v26 }
  0x44   :  { %684 = vmatpush.bf16.msra.mxu2 %v2242_v59 }
  0x46   :  { %216 = vmatpush.bf16.msra.mxu0 %v1590_v32 }
  0x48   :  { %685 = vmatpush.bf16.msra.mxu2 %v2251_v63 }
  0x4a   :  { %217 = vmatpush.bf16.msra.mxu0 %v1582_v47 }
  0x4c   :  { %686 = vmatpush.bf16.msra.mxu2 %v2265_v6 }
  0x4e   :  { %218 = vmatpush.bf16.msra.mxu0 %v1574_v61 }
  0x50   :  { %687 = vmatpush.bf16.msra.mxu2 %v2276_v10 }
  0x52   :  { %219 = vmatpush.bf16.msra.mxu0 %v1566_v12 }
  0x53   :  { %296 = vmatmul.bf16.gmra.mxu2 %v2167_v20 }
  0x61   :  { %v2267_v7 = vpop.permute.xlu2 %382 }
  0x62   :  { %vm384_vm0 = vcmp.eq.s32.totalorder %v2267_v7, 1 }
  0x63   :  { %vm2345_vm4 = vmpackc.low %vm384_vm0, %vm384_vm0 }
  0x69   :  { %v2308_v22 = vpop.permute.xlu2 %390 }
  0x6a   :  { %vm392_vm3 = vcmp.eq.s32.totalorder %v2308_v22, 1 }
  0x6b   :  { %vm393_vm5 = vmpackc.low %vm392_vm3, %vm392_vm3 }
  0x78   :  { %v2260_v4 = vpop.permute.xlu1 %366  ;;  %v2262_v5 = vpop.permute.xlu0 %350 }
  0x79   :  { %vm352_vm10 = vcmp.eq.s32.totalorder %v2262_v5, 1  ;;  %vm368_vm12 = vcmp.eq.s32.totalorder %v2260_v4, 1 }
  0x7a   :  { %vm2285_vm11 = vmpackc.low %vm352_vm10, %vm352_vm10 }
  0x7b   :  { %v354_v21 = vsel %vm2285_vm11, %v41_v11, 0  ;;  %vm369_vm1 = vmpackc.low %vm368_vm12, %vm368_vm12  ;;  %v2421_v11 = vor.u32 %v1813_v9, %v1680_v8 }
  0x7d   :  { %674 = vmatpush.bf16.msra.mxu3 %v2421_v11 }
  0x80   :  { %v2289_v13 = vpop.permute.xlu1 %374  ;;  %v2291_v15 = vpop.permute.xlu0 %358 }
  0x81   :  { %vm360_vm13 = vcmp.eq.s32.totalorder %v2291_v15, 1  ;;  %vm376_vm14 = vcmp.eq.s32.totalorder %v2289_v13, 1 }
  0x82   :  { %vm361_vm15 = vmpackc.low %vm360_vm13, %vm360_vm13 }
  0x83   :  { %v362_v25 = vsel %vm361_vm15, %v42_v16, %v354_v21  ;;  %vm377_vm2 = vmpackc.low %vm376_vm14, %vm376_vm14  ;;  %v1557_v16 = vld [vmem:[%s2731_s2 + $0x20] sm:$0xf]  ;;  %v1549_v21 = vld [vmem:[%s2731_s2 + $0x10] sm:$0xf] }
  0x84   :  { %v370_v29 = vsel %vm369_vm1, %v43_v18, %v362_v25  ;;  %v1785_v18 = vld [vmem:[%s2731_s2 + $0x24] sm:$0xf0]  ;;  %v1550_v24 = vor.u32 %v1783_v23, %v1549_v21 }
  0x85   :  { %v378_v31 = vsel %vm377_vm2, %v44_v19, %v370_v29  ;;  %v1558_v19 = vor.u32 %v1785_v18, %v1557_v16  ;;  %v2454_v29 = vld [vmem:[%s2735_s3] sm:$0x3] }
  0x86   :  { %v386_v43 = vsel %vm2345_vm4, %v45_v30, %v378_v31  ;;  %v71_v30 = vperm.slane %v2454_v29, 1 }
  0x87   :  { %v394_v49 = vsel %vm393_vm5, %v46_v41, %v386_v43  ;;  %220 = vmatpush.bf16.msra.mxu0 %v1558_v19 }
  0x88   :  { %v2357_v39 = vpop.permute.xlu1 %406  ;;  %v2359_v40 = vpop.permute.xlu0 %398 }
  0x89   :  { %vm408_vm6 = vcmp.eq.s32.totalorder %v2357_v39, 1  ;;  %vm400_vm8 = vcmp.eq.s32.totalorder %v2359_v40, 1  ;;  %v1496_v39 = vlaneseq }
  0x8a   :  { %vm409_vm9 = vmpackc.low %vm408_vm6, %vm408_vm6 }
  0x8b   :  { %vm401_vm11 = vmpackc.low %vm400_vm8, %vm400_vm8  ;;  %221 = vmatpush.bf16.msra.mxu0 %v1550_v24 }
  0x8c   :  { %v402_v52 = vsel %vm401_vm11, %v47_v42, %v394_v49 }
  0x8d   :  { %v410_v56 = vsel %vm409_vm9, %v48_v46, %v402_v52  ;;  %v253_v45 = vpop.f32.mrf.mxu1 }
  0x8e   :  { %v435_v58 = vunpack.c.l.b16 %v410_v56  ;;  %v436_v60 = vunpack.c.h.b16 %v410_v56 }
  0x8f   :  { %222 = vmatpush.bf16.msra.mxu0 %v1542_v28 }
  0x90   :  { %v437_v62 = vpack.c.b16 %v435_v58, %v435_v58  ;;  %v438_v1 = vpack.c.b16 %v436_v60, %v436_v60 }
  0x92   :  { %542 = vmatmul.bf16.vlgmr.msrb.gmra.mxu1 %v437_v62  ;;  %1675 = vmatmul.msk.bf16.vlgmr.msrb.gmra.mxu3 %vm195_vm7, %v438_v1  ;;  %v311_v25 = vpop.f32.mrf.mxu3 }
  0x93   :  { %568 = vmatmul.bf16.vlgmr.msrb.gmra.mxu2 %v437_v62  ;;  %763 = vmatpush.bf16.msrb.mxu1 %v2355_v38 }
  0x94   :  { %868 = vmatpush.bf16.msrb.mxu2 %v2242_v59  ;;  %776 = vmatpush.bf16.msrb.mxu3 %v2242_v59 }
  0x95   :  { %855 = vmatpush.bf16.msrb.mxu0 %v2355_v38  ;;  %v2494_v51 = vpop.f32.mrf.mxu1 }
  0x96   :  { %223 = vmatmul.bf16.vlgmr.msra.gmra.mxu0 %v2100_v55 }
  0x97   :  { %764 = vmatpush.bf16.msrb.mxu1 %v2387_v48 }
  0x98   :  { %869 = vmatpush.bf16.msrb.mxu2 %v2251_v63  ;;  %777 = vmatpush.bf16.msrb.mxu3 %v2251_v63 }
  0x99   :  { %856 = vmatpush.bf16.msrb.mxu0 %v2387_v48 }
  0x9a   :  { %v313_v32 = vpop.f32.mrf.mxu3 }
  0x9b   :  { %765 = vmatpush.bf16.msrb.mxu1 %v2405_v57 }
  0x9c   :  { %870 = vmatpush.bf16.msrb.mxu2 %v2265_v6  ;;  %778 = vmatpush.bf16.msrb.mxu3 %v2265_v6 }
  0x9d   :  { %857 = vmatpush.bf16.msrb.mxu0 %v2405_v57  ;;  %v2500_v60 = vpop.f32.mrf.mxu1 }
  0x9f   :  { %766 = vmatpush.bf16.msrb.mxu1 %v2421_v11 }
  0xa0   :  { %871 = vmatpush.bf16.msrb.mxu2 %v2276_v10  ;;  %779 = vmatpush.bf16.msrb.mxu3 %v2276_v10 }
  0xa1   :  { %858 = vmatpush.bf16.msrb.mxu0 %v2421_v11 }
  0xa2   :  { %1676 = vmatmul.msk.bf16.vlgmr.msra.gmra.mxu1 %vm195_vm7, %v438_v1  ;;  %675 = vmatmul.bf16.vlgmr.msra.gmra.mxu3 %v1939_v0  ;;  %v316_v35 = vpop.f32.mrf.mxu3 }
  0xa3   :  { %688 = vmatmul.bf16.vlgmr.msra.gmra.mxu2 %v1939_v0  ;;  %947 = vmatpush.bf16.msra.mxu1 %v2355_v38 }
  0xa4   :  { %960 = vmatpush.bf16.msra.mxu3 %v2242_v59  ;;  %1052 = vmatpush.bf16.msra.mxu2 %v2242_v59 }
  0xa5   :  { %1039 = vmatpush.bf16.msra.mxu0 %v2355_v38  ;;  %v2503_v61 = vpop.f32.mrf.mxu1 }
  0xa6   :  { %v282_v31 = vpop.f32.mrf.mxu2  ;;  %228 = vmatmul.bf16.gmra.mxu0 %v2147_v14 }
  0xa7   :  { %v283_v33 = vadd.f32 %v282_v31, %v71_v30  ;;  %948 = vmatpush.bf16.msra.mxu1 %v2387_v48 }
  0xa8   :  { %961 = vmatpush.bf16.msra.mxu3 %v2251_v63  ;;  %1053 = vmatpush.bf16.msra.mxu2 %v2251_v63 }
  0xa9   :  { %v2469_v0 = vadd.f32 %v311_v25, %v283_v33  ;;  %1040 = vmatpush.bf16.msra.mxu0 %v2387_v48 }
  0xaa   :  { %v318_v43 = vpop.f32.mrf.mxu3 }
  0xab   :  { %949 = vmatpush.bf16.msra.mxu1 %v2405_v57 }
  0xac   :  { %962 = vmatpush.bf16.msra.mxu3 %v2265_v6  ;;  %1054 = vmatpush.bf16.msra.mxu2 %v2265_v6 }
  0xad   :  { %1041 = vmatpush.bf16.msra.mxu0 %v2405_v57  ;;  %v2507_v9 = vpop.f32.mrf.mxu1 }
  0xae   :  { %v284_v55 = vpop.f32.mrf.mxu2 }
  0xaf   :  { %v285_v34 = vadd.f32 %v284_v55, %v71_v30  ;;  %950 = vmatpush.bf16.msra.mxu1 %v2421_v11 }
  0xb0   :  { %963 = vmatpush.bf16.msra.mxu3 %v2276_v10  ;;  %1055 = vmatpush.bf16.msra.mxu2 %v2276_v10 }
  0xb1   :  { %v2479_v36 = vadd.f32 %v313_v32, %v285_v34  ;;  %1042 = vmatpush.bf16.msra.mxu0 %v2421_v11 }
  0xb2   :  { %v321_v49 = vpop.f32.mrf.mxu3 }
  0xb5   :  { %v2511_v18 = vpop.f32.mrf.mxu1 }
  0xb6   :  { %v287_v37 = vpop.f32.mrf.mxu2  ;;  %233 = vmatmul.bf16.gmra.mxu0 %v2158_v17 }
  0xb7   :  { %v288_v41 = vadd.f32 %v287_v37, %v71_v30 }
  0xb9   :  { %v2487_v42 = vadd.f32 %v316_v35, %v288_v41 }
  0xba   :  { %v323_v54 = vpop.f32.mrf.mxu3 }
  0xbd   :  { %v2513_v19 = vpop.f32.mrf.mxu1 }
  0xbe   :  { %v289_v44 = vpop.f32.mrf.mxu2 }
  0xbf   :  { %v290_v46 = vadd.f32 %v289_v44, %v71_v30 }
  0xc1   :  { %v2491_v47 = vadd.f32 %v318_v43, %v290_v46 }
  0xc2   :  { %v326_v2 = vpop.f32.mrf.mxu3 }
  0xc5   :  { %v2515_v21 = vpop.f32.mrf.mxu1 }
  0xc6   :  { %v292_v50 = vpop.f32.mrf.mxu2  ;;  %238 = vmatmul.bf16.gmra.mxu0 %v2167_v20  ;;  %v428_v20 = vld [vmem:[%s2736_s6] sm:$0x3]  ;;  %s1940_s6 = smov 64  }
  0xc7   :  { %v293_v14 = vadd.f32 %v292_v50, %v71_v30  ;;  %v430_v24 = vperm.slane %v428_v20, 0  ;;  %v431_v31 = vperm.slane %v428_v20, 1 }
  0xc9   :  { %v2496_v52 = vadd.f32 %v321_v49, %v293_v14  ;;  %v2527_v14 = vperm.slane %v2454_v29, 0 }
  0xca   :  { %v328_v12 = vpop.f32.mrf.mxu3 }
  0xce   :  { %v294_v53 = vpop.f32.mrf.mxu2 }
  0xcf   :  { %v295_v56 = vadd.f32 %v294_v53, %v71_v30 }
  0xd1   :  { %v2498_v58 = vadd.f32 %v323_v54, %v295_v56 }
  0xd6   :  { %v297_v62 = vpop.f32.mrf.mxu2 }
  0xd7   :  { %v298_v1 = vadd.f32 %v297_v62, %v71_v30 }
  0xd9   :  { %v2505_v17 = vadd.f32 %v326_v2, %v298_v1 }
  0xde   :  { %v299_v3 = vpop.f32.mrf.mxu2 }
  0xdf   :  { %v300_v8 = vadd.f32 %v299_v3, %v71_v30 }
  0xe1   :  { %v2509_v16 = vadd.f32 %v328_v12, %v300_v8 }
 0x10f   :  { %v543_v23 = vpop.f32.mrf.mxu1 }
 0x110   :  { %v544_v25 = vadd.f32 %v543_v23, %v430_v24 }
 0x113   :  { %v224_v53 = vpop.f32.mrf.mxu0 }
 0x114   :  { %v225_v54 = vadd.f32 %v224_v53, %v2527_v14 }
 0x115   :  { %v556_v26 = vpop.f32.mrf.mxu3 }
 0x116   :  { %v2520_v27 = vadd.f32 %v556_v26, %v544_v25  ;;  %v569_v28 = vpop.f32.mrf.mxu2  ;;  %v254_v56 = vadd.f32 %v253_v45, %v225_v54 }
 0x117   :  { %v545_v30 = vpop.f32.mrf.mxu1  ;;  %v570_v33 = vadd.f32 %v569_v28, %v431_v31 }
 0x11d   :  { %v558_v32 = vpop.f32.mrf.mxu3 }
 0x11e   :  { %v571_v55 = vpop.f32.mrf.mxu2 }
 0x11f   :  { %v582_v34 = vpop.f32.mrf.mxu1 }
 0x120   :  { %v2522_v35 = vadd.f32 %v582_v34, %v570_v33 }
 0x125   :  { %v676_v37 = vpop.f32.mrf.mxu3 }
 0x126   :  { %v689_v41 = vpop.f32.mrf.mxu2  ;;  %v693_v62 = vadd.f32 %v676_v37, %v254_v56 }
 0x127   :  { %v694_v43 = vadd.f32 %v689_v41, %v2469_v0  ;;  %v584_v44 = vpop.f32.mrf.mxu1 }
 0x128   :  { %v1710_v1 = vmul.f32 -1.442695, %v693_v62 }
 0x129   :  { %1835 = vtanh.f32 %v694_v43  ;;  %v1711_v34 = vmul.f32 -1.442695, %v694_v43 }
 0x12a   :  { %1837 = vpow2.f32 %v1710_v1 }
 0x12d   :  { %v678_v46 = vpop.f32.mrf.mxu3 }
 0x12e   :  { %v691_v49 = vpop.f32.mrf.mxu2 }
 0x12f   :  { %v1836_v50 = vpop.eup %1835 }
 0x130   :  { %736 = vrot.lane.b32.xlu2 %v1836_v50, %s1940_s6  ;;  %v1838_v2 = vpop.eup %1837 }
 0x131   :  { %v701_v0 = vadd.f32 1.0, %v1838_v2 }
 0x133   :  { %1839 = vrcp.f32 %v701_v0  ;;  %vm708_vm7 = vweird.f32 %v701_v0  ;;  %v714_v23 = vand.u32 2147483648, %v701_v0  ;;  %v712_v29 = vand.u32 2147483647, %v701_v0 }
 0x135   :  { %v715_v25 = vor.u32 1.1754944e-38, %v714_v23  ;;  %vm713_vm2 = vcmp.eq.f32.partialorder %v712_v29, 8.507059e+37 }
 0x139   :  { %v1840_v3 = vpop.eup %1839 }
 0x13a   :  { %v704_v8 = vmul.f32 %v1840_v3, %v701_v0  ;;  %vm709_vm15 = vweird.f32 %v1840_v3 }
 0x13b   :  { %vm710_vm1 = vmor %vm708_vm7, %vm709_vm15  ;;  %vm663_vm7 = vcmask 523264  }
 0x13c   :  { %v705_v12 = vsub.f32 1.0, %v704_v8 }
 0x13e   :  { %v706_v20 = vmul.f32 %v1840_v3, %v705_v12 }
 0x140   :  { %v707_v24 = vadd.f32 %v1840_v3, %v706_v20 }
 0x142   :  { %v711_v26 = vsel %vm710_vm1, %v1840_v3, %v707_v24 }
 0x143   :  { %v716_v45 = vsel %vm713_vm2, %v715_v25, %v711_v26  ;;  %v226_v25 = vpop.f32.mrf.mxu0 }
 0x144   :  { %v734_v31 = vmul.f32 0.0, %v716_v45  ;;  %v227_v26 = vadd.f32 %v226_v25, %v2527_v14 }
 0x14b   :  { %v229_v5 = vpop.f32.mrf.mxu0 }
 0x153   :  { %v2576_v15 = vpop.f32.mrf.mxu0 }
 0x18a   :  { %v737_v28 = vpop.permute.xlu2 %736 }
 0x18b   :  { %v739_v30 = vmul.f32 %v737_v28, %v716_v45  ;;  %v256_v45 = vadd.f32 %v2494_v51, %v227_v26 }
 0x18d   :  { %741 = vrot.lane.b32.xlu0 %v739_v30, %s1940_s6 }
 0x1ff   :  { %v742_v32 = vpop.permute.xlu0 %741 }
 0x200   :  { %v2531_v33 = vadd.f32 %v742_v32, %v734_v31 }
 0x202   :  { %1841 = vtanh.f32 %v2531_v33 }
 0x203   :  { %1843 = vpow2.f32 %v1711_v34 }
 0x208   :  { %v1842_v55 = vpop.eup %1841 }
 0x209   :  { %747 = vrot.lane.b32.xlu1 %v1842_v55, %s1940_s6  ;;  %v1844_v37 = vpop.eup %1843 }
 0x20a   :  { %v702_v41 = vadd.f32 1.0, %v1844_v37 }
 0x20c   :  { %1845 = vrcp.f32 %v702_v41  ;;  %v729_v54 = vand.u32 2147483648, %v702_v41  ;;  %vm723_vm5 = vweird.f32 %v702_v41  ;;  %v727_v56 = vand.u32 2147483647, %v702_v41 }
 0x20e   :  { %v730_v1 = vor.u32 1.1754944e-38, %v729_v54  ;;  %vm728_vm11 = vcmp.eq.f32.partialorder %v727_v56, 8.507059e+37 }
 0x212   :  { %v1846_v44 = vpop.eup %1845 }
 0x213   :  { %v719_v46 = vmul.f32 %v1846_v44, %v702_v41  ;;  %vm724_vm4 = vweird.f32 %v1846_v44 }
 0x214   :  { %vm725_vm9 = vmor %vm723_vm5, %vm724_vm4 }
 0x215   :  { %v720_v49 = vsub.f32 1.0, %v719_v46 }
 0x217   :  { %v721_v50 = vmul.f32 %v1846_v44, %v720_v49 }
 0x219   :  { %v722_v53 = vadd.f32 %v1846_v44, %v721_v50 }
 0x21b   :  { %v726_v62 = vsel %vm725_vm9, %v1846_v44, %v722_v53 }
 0x21c   :  { %v731_v0 = vsel %vm728_vm11, %v730_v1, %v726_v62 }
 0x27b   :  { %v748_v2 = vpop.permute.xlu1 %747 }
 0x27c   :  { %v2535_v43 = vmul.f32 %v748_v2, %v731_v0 }
 0x27e   :  { %v755_v3 = vpack.c.bf16 %v2535_v43, %v2535_v43 }
 0x280   :  { %1712 = vmatmul.msk.bf16.vlgmr.msrb.gmra.mxu1 %vm663_vm7, %v755_v3  ;;  %1713 = vmatmul.msk.bf16.vlgmr.msrb.gmra.mxu3 %vm663_vm7, %v755_v3 }
 0x281   :  { %1144 = vmatpush.bf16.msrb.mxu3 %v2242_v59  ;;  %1131 = vmatpush.bf16.msrb.mxu1 %v2355_v38 }
 0x285   :  { %1145 = vmatpush.bf16.msrb.mxu3 %v2251_v63  ;;  %1132 = vmatpush.bf16.msrb.mxu1 %v2387_v48 }
 0x289   :  { %1146 = vmatpush.bf16.msrb.mxu3 %v2265_v6  ;;  %1133 = vmatpush.bf16.msrb.mxu1 %v2405_v57 }
 0x28d   :  { %1147 = vmatpush.bf16.msrb.mxu3 %v2276_v10  ;;  %1134 = vmatpush.bf16.msrb.mxu1 %v2421_v11 }
 0x2fd   :  { %v768_v8 = vpop.f32.mrf.mxu1 }
 0x2fe   :  { %v785_v28 = vadd.f32 %v768_v8, %v256_v45 }
 0x300   :  { %v1714_v30 = vmul.f32 -1.442695, %v785_v28 }
 0x303   :  { %v781_v12 = vpop.f32.mrf.mxu3 }
 0x304   :  { %v786_v20 = vadd.f32 %v781_v12, %v2479_v36 }
 0x305   :  { %v770_v23 = vpop.f32.mrf.mxu1 }
 0x306   :  { %1847 = vtanh.f32 %v786_v20  ;;  %v1715_v0 = vmul.f32 -1.442695, %v786_v20 }
 0x307   :  { %1849 = vpow2.f32 %v1714_v30 }
 0x30b   :  { %v783_v24 = vpop.f32.mrf.mxu3 }
 0x30c   :  { %v1848_v29 = vpop.eup %1847 }
 0x30d   :  { %828 = vrot.lane.b32.xlu2 %v1848_v29, %s1940_s6  ;;  %v1850_v31 = vpop.eup %1849 }
 0x30e   :  { %v793_v32 = vadd.f32 1.0, %v1850_v31 }
 0x310   :  { %1851 = vrcp.f32 %v793_v32  ;;  %v806_v44 = vand.u32 2147483648, %v793_v32  ;;  %vm800_vm1 = vweird.f32 %v793_v32  ;;  %v804_v46 = vand.u32 2147483647, %v793_v32 }
 0x312   :  { %v807_v50 = vor.u32 1.1754944e-38, %v806_v44  ;;  %vm805_vm4 = vcmp.eq.f32.partialorder %v804_v46, 8.507059e+37  ;;  %v230_v44 = vadd.f32 %v229_v5, %v2527_v14 }
 0x314   :  { %v259_v46 = vadd.f32 %v2500_v60, %v230_v44 }
 0x316   :  { %v1852_v55 = vpop.eup %1851 }
 0x317   :  { %v796_v34 = vmul.f32 %v1852_v55, %v793_v32  ;;  %vm801_vm15 = vweird.f32 %v1852_v55  ;;  %v751_v32 = vsel %vm352_vm10, %v2535_v43, 0.0  ;;  %v2578_v43 = vpop.f32.mrf.mxu0 }
 0x318   :  { %vm802_vm2 = vmor %vm800_vm1, %vm801_vm15 }
 0x319   :  { %v797_v36 = vsub.f32 1.0, %v796_v34 }
 0x31b   :  { %v798_v37 = vmul.f32 %v1852_v55, %v797_v36 }
 0x31d   :  { %v799_v41 = vadd.f32 %v1852_v55, %v798_v37 }
 0x31f   :  { %v803_v49 = vsel %vm802_vm2, %v1852_v55, %v799_v41  ;;  %v2580_v36 = vpop.f32.mrf.mxu0 }
 0x320   :  { %v808_v53 = vsel %vm805_vm4, %v807_v50, %v803_v49 }
 0x321   :  { %v826_v56 = vmul.f32 %v808_v53, %v2531_v33 }
 0x327   :  { %v2582_v37 = vpop.f32.mrf.mxu0 }
 0x32f   :  { %v2584_v41 = vpop.f32.mrf.mxu0 }
 0x367   :  { %v829_v51 = vpop.permute.xlu2 %828 }
 0x368   :  { %v831_v54 = vmul.f32 %v829_v51, %v808_v53 }
 0x36a   :  { %833 = vrot.lane.b32.xlu0 %v831_v54, %s1940_s6 }
 0x3dc   :  { %v834_v62 = vpop.permute.xlu0 %833 }
 0x3dd   :  { %v2555_v1 = vadd.f32 %v834_v62, %v826_v56 }
 0x3df   :  { %1853 = vtanh.f32 %v2555_v1 }
 0x3e0   :  { %1855 = vpow2.f32 %v1715_v0 }
 0x3e5   :  { %v1854_v2 = vpop.eup %1853 }
 0x3e6   :  { %839 = vrot.lane.b32.xlu1 %v1854_v2, %s1940_s6  ;;  %v1856_v3 = vpop.eup %1855 }
 0x3e7   :  { %v794_v8 = vadd.f32 1.0, %v1856_v3 }
 0x3e9   :  { %1857 = vrcp.f32 %v794_v8  ;;  %v821_v33 = vand.u32 2147483648, %v794_v8  ;;  %vm815_vm9 = vweird.f32 %v794_v8  ;;  %v819_v26 = vand.u32 2147483647, %v794_v8 }
 0x3eb   :  { %v822_v28 = vor.u32 1.1754944e-38, %v821_v33  ;;  %vm820_vm15 = vcmp.eq.f32.partialorder %v819_v26, 8.507059e+37 }
 0x3ef   :  { %v1858_v12 = vpop.eup %1857 }
 0x3f0   :  { %v811_v23 = vmul.f32 %v1858_v12, %v794_v8  ;;  %vm816_vm5 = vweird.f32 %v1858_v12 }
 0x3f1   :  { %vm817_vm11 = vmor %vm815_vm9, %vm816_vm5 }
 0x3f2   :  { %v812_v24 = vsub.f32 1.0, %v811_v23 }
 0x3f4   :  { %v813_v29 = vmul.f32 %v1858_v12, %v812_v24 }
 0x3f6   :  { %v814_v25 = vadd.f32 %v1858_v12, %v813_v29 }
 0x3f8   :  { %v818_v45 = vsel %vm817_vm11, %v1858_v12, %v814_v25 }
 0x3f9   :  { %v823_v30 = vsel %vm820_vm15, %v822_v28, %v818_v45 }
 0x458   :  { %v840_v31 = vpop.permute.xlu1 %839 }
 0x459   :  { %v842_v20 = vmul.f32 %v840_v31, %v823_v30 }
 0x45b   :  { %v2564_v55 = vsel %vm360_vm13, %v842_v20, %v751_v32  ;;  %v847_v34 = vpack.c.bf16 %v842_v20, %v842_v20 }
 0x45d   :  { %1716 = vmatmul.msk.bf16.vlgmr.msrb.gmra.mxu0 %vm663_vm7, %v847_v34  ;;  %1717 = vmatmul.msk.bf16.vlgmr.msrb.gmra.mxu2 %vm663_vm7, %v847_v34 }
 0x45e   :  { %1236 = vmatpush.bf16.msrb.mxu2 %v2242_v59  ;;  %1223 = vmatpush.bf16.msrb.mxu0 %v2355_v38 }
 0x462   :  { %1237 = vmatpush.bf16.msrb.mxu2 %v2251_v63  ;;  %1224 = vmatpush.bf16.msrb.mxu0 %v2387_v48 }
 0x466   :  { %1238 = vmatpush.bf16.msrb.mxu2 %v2265_v6  ;;  %1225 = vmatpush.bf16.msrb.mxu0 %v2405_v57 }
 0x46a   :  { %1239 = vmatpush.bf16.msrb.mxu2 %v2276_v10  ;;  %1226 = vmatpush.bf16.msrb.mxu0 %v2421_v11 }
 0x4da   :  { %v860_v49 = vpop.f32.mrf.mxu0 }
 0x4db   :  { %v877_v50 = vadd.f32 %v860_v49, %v259_v46 }
 0x4dd   :  { %v1718_v2 = vmul.f32 -1.442695, %v877_v50 }
 0x4e0   :  { %v873_v51 = vpop.f32.mrf.mxu2 }
 0x4e1   :  { %v878_v53 = vadd.f32 %v873_v51, %v2487_v42 }
 0x4e2   :  { %v862_v54 = vpop.f32.mrf.mxu0 }
 0x4e3   :  { %1859 = vtanh.f32 %v878_v53  ;;  %v1719_v34 = vmul.f32 -1.442695, %v878_v53 }
 0x4e4   :  { %1861 = vpow2.f32 %v1718_v2 }
 0x4e8   :  { %v875_v56 = vpop.f32.mrf.mxu2 }
 0x4e9   :  { %v1860_v62 = vpop.eup %1859 }
 0x4ea   :  { %920 = vrot.lane.b32.xlu2 %v1860_v62, %s1940_s6  ;;  %v1862_v0 = vpop.eup %1861 }
 0x4eb   :  { %v885_v3 = vadd.f32 1.0, %v1862_v0 }
 0x4ed   :  { %1863 = vrcp.f32 %v885_v3  ;;  %v898_v29 = vand.u32 2147483648, %v885_v3  ;;  %vm892_vm13 = vweird.f32 %v885_v3  ;;  %v896_v42 = vand.u32 2147483647, %v885_v3 }
 0x4ef   :  { %v899_v33 = vor.u32 1.1754944e-38, %v898_v29  ;;  %vm897_vm2 = vcmp.eq.f32.partialorder %v896_v42, 8.507059e+37 }
 0x4f3   :  { %v1864_v8 = vpop.eup %1863 }
 0x4f4   :  { %v888_v12 = vmul.f32 %v1864_v8, %v885_v3  ;;  %vm893_vm10 = vweird.f32 %v1864_v8 }
 0x4f5   :  { %vm894_vm1 = vmor %vm892_vm13, %vm893_vm10 }
 0x4f6   :  { %v889_v23 = vsub.f32 1.0, %v888_v12 }
 0x4f8   :  { %v890_v60 = vmul.f32 %v1864_v8, %v889_v23 }
 0x4fa   :  { %v891_v24 = vadd.f32 %v1864_v8, %v890_v60 }
 0x4fc   :  { %v895_v25 = vsel %vm894_vm1, %v1864_v8, %v891_v24 }
 0x4fd   :  { %v900_v45 = vsel %vm897_vm2, %v899_v33, %v895_v25 }
 0x4fe   :  { %v918_v30 = vmul.f32 %v900_v45, %v2555_v1 }
 0x544   :  { %v921_v26 = vpop.permute.xlu2 %920 }
 0x545   :  { %v923_v28 = vmul.f32 %v921_v26, %v900_v45 }
 0x547   :  { %925 = vrot.lane.b32.xlu0 %v923_v28, %s1940_s6 }
 0x5b9   :  { %v926_v31 = vpop.permute.xlu0 %925 }
 0x5ba   :  { %v2592_v20 = vadd.f32 %v926_v31, %v918_v30 }
 0x5bc   :  { %1865 = vtanh.f32 %v2592_v20 }
 0x5bd   :  { %1867 = vpow2.f32 %v1719_v34 }
 0x5c2   :  { %v1866_v32 = vpop.eup %1865 }
 0x5c3   :  { %931 = vrot.lane.b32.xlu1 %v1866_v32, %s1940_s6  ;;  %v1868_v5 = vpop.eup %1867 }
 0x5c4   :  { %v886_v44 = vadd.f32 1.0, %v1868_v5 }
 0x5c6   :  { %1869 = vrcp.f32 %v886_v44  ;;  %v913_v1 = vand.u32 2147483648, %v886_v44  ;;  %vm907_vm5 = vweird.f32 %v886_v44  ;;  %v911_v56 = vand.u32 2147483647, %v886_v44 }
 0x5c8   :  { %v914_v2 = vor.u32 1.1754944e-38, %v913_v1  ;;  %vm912_vm11 = vcmp.eq.f32.partialorder %v911_v56, 8.507059e+37 }
 0x5cc   :  { %v1870_v46 = vpop.eup %1869 }
 0x5cd   :  { %v903_v49 = vmul.f32 %v1870_v46, %v886_v44  ;;  %vm908_vm4 = vweird.f32 %v1870_v46 }
 0x5ce   :  { %vm909_vm9 = vmor %vm907_vm5, %vm908_vm4 }
 0x5cf   :  { %v904_v50 = vsub.f32 1.0, %v903_v49 }
 0x5d1   :  { %v905_v51 = vmul.f32 %v1870_v46, %v904_v50 }
 0x5d3   :  { %v906_v54 = vadd.f32 %v1870_v46, %v905_v51 }
 0x5d5   :  { %v910_v62 = vsel %vm909_vm9, %v1870_v46, %v906_v54 }
 0x5d6   :  { %v915_v0 = vsel %vm912_vm11, %v914_v2, %v910_v62 }
 0x635   :  { %v932_v3 = vpop.permute.xlu1 %931 }
 0x636   :  { %v934_v53 = vmul.f32 %v932_v3, %v915_v0 }
 0x638   :  { %v2599_v8 = vsel %vm368_vm12, %v934_v53, %v2564_v55  ;;  %v939_v12 = vpack.c.bf16 %v934_v53, %v934_v53 }
 0x63a   :  { %1720 = vmatmul.msk.bf16.vlgmr.msra.gmra.mxu1 %vm663_vm7, %v939_v12  ;;  %1721 = vmatmul.msk.bf16.vlgmr.msra.gmra.mxu3 %vm663_vm7, %v939_v12 }
 0x63b   :  { %1328 = vmatpush.bf16.msra.mxu3 %v2242_v59  ;;  %1315 = vmatpush.bf16.msra.mxu1 %v2355_v38 }
 0x63f   :  { %1329 = vmatpush.bf16.msra.mxu3 %v2251_v63  ;;  %1316 = vmatpush.bf16.msra.mxu1 %v2387_v48  ;;  %v232_v63 = vadd.f32 %v2576_v15, %v2527_v14 }
 0x643   :  { %1330 = vmatpush.bf16.msra.mxu3 %v2265_v6  ;;  %1317 = vmatpush.bf16.msra.mxu1 %v2405_v57  ;;  %v261_v6 = vadd.f32 %v2503_v61, %v232_v63 }
 0x647   :  { %1331 = vmatpush.bf16.msra.mxu3 %v2276_v10  ;;  %1318 = vmatpush.bf16.msra.mxu1 %v2421_v11 }
 0x6b7   :  { %v952_v4 = vpop.f32.mrf.mxu1 }
 0x6b8   :  { %v969_v48 = vadd.f32 %v952_v4, %v261_v6 }
 0x6ba   :  { %v1722_v57 = vmul.f32 -1.442695, %v969_v48 }
 0x6bd   :  { %v965_v55 = vpop.f32.mrf.mxu3 }
 0x6be   :  { %v970_v23 = vadd.f32 %v965_v55, %v2491_v47 }
 0x6bf   :  { %v954_v60 = vpop.f32.mrf.mxu1 }
 0x6c0   :  { %1871 = vtanh.f32 %v970_v23  ;;  %v1723_v44 = vmul.f32 -1.442695, %v970_v23  ;;  %v235_v23 = vadd.f32 %v2578_v43, %v2527_v14 }
 0x6c1   :  { %1873 = vpow2.f32 %v1722_v57 }
 0x6c2   :  { %v264_v60 = vadd.f32 %v2507_v9, %v235_v23 }
 0x6c5   :  { %v967_v59 = vpop.f32.mrf.mxu3 }
 0x6c6   :  { %v1872_v38 = vpop.eup %1871 }
 0x6c7   :  { %1012 = vrot.lane.b32.xlu2 %v1872_v38, %s1940_s6  ;;  %v1874_v10 = vpop.eup %1873 }
 0x6c8   :  { %v977_v11 = vadd.f32 1.0, %v1874_v10 }
 0x6ca   :  { %1875 = vrcp.f32 %v977_v11  ;;  %v990_v33 = vand.u32 2147483648, %v977_v11  ;;  %vm984_vm15 = vweird.f32 %v977_v11  ;;  %v988_v26 = vand.u32 2147483647, %v977_v11 }
 0x6cc   :  { %v991_v15 = vor.u32 1.1754944e-38, %v990_v33  ;;  %vm989_vm13 = vcmp.eq.f32.partialorder %v988_v26, 8.507059e+37 }
 0x6d0   :  { %v1876_v24 = vpop.eup %1875 }
 0x6d1   :  { %v980_v29 = vmul.f32 %v1876_v24, %v977_v11  ;;  %vm985_vm12 = vweird.f32 %v1876_v24 }
 0x6d2   :  { %vm986_vm10 = vmor %vm984_vm15, %vm985_vm12 }
 0x6d3   :  { %v981_v47 = vsub.f32 1.0, %v980_v29 }
 0x6d5   :  { %v982_v42 = vmul.f32 %v1876_v24, %v981_v47 }
 0x6d7   :  { %v983_v25 = vadd.f32 %v1876_v24, %v982_v42 }
 0x6d9   :  { %v987_v45 = vsel %vm986_vm10, %v1876_v24, %v983_v25 }
 0x6da   :  { %v992_v28 = vsel %vm989_vm13, %v991_v15, %v987_v45 }
 0x6db   :  { %v1010_v31 = vmul.f32 %v992_v28, %v2592_v20 }
 0x721   :  { %v1013_v61 = vpop.permute.xlu2 %1012 }
 0x722   :  { %v1015_v30 = vmul.f32 %v1013_v61, %v992_v28 }
 0x724   :  { %1017 = vrot.lane.b32.xlu0 %v1015_v30, %s1940_s6 }
 0x796   :  { %v1018_v32 = vpop.permute.xlu0 %1017 }
 0x797   :  { %v1020_v34 = vadd.f32 %v1018_v32, %v1010_v31 }
 0x799   :  { %1877 = vtanh.f32 %v1020_v34 }
 0x79a   :  { %1879 = vpow2.f32 %v1723_v44 }
 0x79f   :  { %v1878_v5 = vpop.eup %1877 }
 0x7a0   :  { %1023 = vrot.lane.b32.xlu1 %v1878_v5, %s1940_s6  ;;  %v1880_v46 = vpop.eup %1879 }
 0x7a1   :  { %v978_v49 = vadd.f32 1.0, %v1880_v46 }
 0x7a3   :  { %1881 = vrcp.f32 %v978_v49  ;;  %v1005_v62 = vand.u32 2147483648, %v978_v49  ;;  %vm999_vm2 = vweird.f32 %v978_v49  ;;  %v1003_v20 = vand.u32 2147483647, %v978_v49 }
 0x7a5   :  { %v1006_v0 = vor.u32 1.1754944e-38, %v1005_v62  ;;  %vm1004_vm5 = vcmp.eq.f32.partialorder %v1003_v20, 8.507059e+37 }
 0x7a9   :  { %v1882_v50 = vpop.eup %1881 }
 0x7aa   :  { %v995_v51 = vmul.f32 %v1882_v50, %v978_v49  ;;  %vm1000_vm1 = vweird.f32 %v1882_v50 }
 0x7ab   :  { %vm1001_vm4 = vmor %vm999_vm2, %vm1000_vm1 }
 0x7ac   :  { %v996_v54 = vsub.f32 1.0, %v995_v51 }
 0x7ae   :  { %v997_v1 = vmul.f32 %v1882_v50, %v996_v54 }
 0x7b0   :  { %v998_v56 = vadd.f32 %v1882_v50, %v997_v1 }
 0x7b2   :  { %v1002_v2 = vsel %vm1001_vm4, %v1882_v50, %v998_v56 }
 0x7b3   :  { %v1007_v3 = vsel %vm1004_vm5, %v1006_v0, %v1002_v2 }
 0x812   :  { %v1024_v53 = vpop.permute.xlu1 %1023 }
 0x813   :  { %v1026_v12 = vmul.f32 %v1024_v53, %v1007_v3 }
 0x815   :  { %v2622_v4 = vsel %vm376_vm14, %v1026_v12, %v2599_v8  ;;  %v1031_v55 = vpack.c.bf16 %v1026_v12, %v1026_v12  ;;  %v237_v12 = vadd.f32 %v2580_v36, %v2527_v14 }
 0x817   :  { %1724 = vmatmul.msk.bf16.vlgmr.msra.gmra.mxu0 %vm663_vm7, %v1031_v55  ;;  %1725 = vmatmul.msk.bf16.vlgmr.msra.gmra.mxu2 %vm663_vm7, %v1031_v55  ;;  %v266_v55 = vadd.f32 %v2511_v18, %v237_v12 }
 0x894   :  { %v1044_v59 = vpop.f32.mrf.mxu0 }
 0x895   :  { %v1061_v38 = vadd.f32 %v1044_v59, %v264_v60 }
 0x897   :  { %v1726_v57 = vmul.f32 -1.442695, %v1061_v38 }
 0x89a   :  { %v1057_v63 = vpop.f32.mrf.mxu2 }
 0x89b   :  { %v1062_v6 = vadd.f32 %v1057_v63, %v2496_v52 }
 0x89c   :  { %v1046_v48 = vpop.f32.mrf.mxu0 }
 0x89d   :  { %1883 = vtanh.f32 %v1062_v6  ;;  %v1727_v32 = vmul.f32 -1.442695, %v1062_v6 }
 0x89e   :  { %1885 = vpow2.f32 %v1726_v57 }
 0x8a2   :  { %v1059_v13 = vpop.f32.mrf.mxu2 }
 0x8a3   :  { %v1884_v8 = vpop.eup %1883 }
 0x8a4   :  { %1104 = vrot.lane.b32.xlu2 %v1884_v8, %s1940_s6  ;;  %v1886_v10 = vpop.eup %1885 }
 0x8a5   :  { %v1069_v11 = vadd.f32 1.0, %v1886_v10 }
 0x8a7   :  { %1887 = vrcp.f32 %v1069_v11  ;;  %v1082_v42 = vand.u32 2147483648, %v1069_v11  ;;  %vm1076_vm9 = vweird.f32 %v1069_v11  ;;  %v1080_v52 = vand.u32 2147483647, %v1069_v11 }
 0x8a9   :  { %v1083_v33 = vor.u32 1.1754944e-38, %v1082_v42  ;;  %vm1081_vm12 = vcmp.eq.f32.partialorder %v1080_v52, 8.507059e+37 }
 0x8ad   :  { %v1888_v24 = vpop.eup %1887 }
 0x8ae   :  { %v1072_v43 = vmul.f32 %v1888_v24, %v1069_v11  ;;  %vm1077_vm14 = vweird.f32 %v1888_v24 }
 0x8af   :  { %vm1078_vm11 = vmor %vm1076_vm9, %vm1077_vm14 }
 0x8b0   :  { %v1073_v29 = vsub.f32 1.0, %v1072_v43 }
 0x8b2   :  { %v1074_v9 = vmul.f32 %v1888_v24, %v1073_v29 }
 0x8b4   :  { %v1075_v47 = vadd.f32 %v1888_v24, %v1074_v9 }
 0x8b6   :  { %v1079_v25 = vsel %vm1078_vm11, %v1888_v24, %v1075_v47 }
 0x8b7   :  { %v1084_v45 = vsel %vm1081_vm12, %v1083_v33, %v1079_v25 }
 0x8b8   :  { %v1102_v61 = vmul.f32 %v1084_v45, %v1020_v34 }
 0x8fe   :  { %v1105_v26 = vpop.permute.xlu2 %1104 }
 0x8ff   :  { %v1107_v15 = vmul.f32 %v1105_v26, %v1084_v45 }
 0x901   :  { %1109 = vrot.lane.b32.xlu0 %v1107_v15, %s1940_s6 }
 0x973   :  { %v1110_v28 = vpop.permute.xlu0 %1109 }
 0x974   :  { %v1112_v30 = vadd.f32 %v1110_v28, %v1102_v61 }
 0x976   :  { %1889 = vtanh.f32 %v1112_v30 }
 0x977   :  { %1891 = vpow2.f32 %v1727_v32 }
 0x97c   :  { %v1890_v31 = vpop.eup %1889 }
 0x97d   :  { %1115 = vrot.lane.b32.xlu1 %v1890_v31, %s1940_s6  ;;  %v1892_v5 = vpop.eup %1891 }
 0x97e   :  { %v1070_v44 = vadd.f32 1.0, %v1892_v5 }
 0x980   :  { %1893 = vrcp.f32 %v1070_v44  ;;  %v1097_v1 = vand.u32 2147483648, %v1070_v44  ;;  %vm1091_vm10 = vweird.f32 %v1070_v44  ;;  %v1095_v34 = vand.u32 2147483647, %v1070_v44 }
 0x982   :  { %v1098_v62 = vor.u32 1.1754944e-38, %v1097_v1  ;;  %vm1096_vm1 = vcmp.eq.f32.partialorder %v1095_v34, 8.507059e+37 }
 0x986   :  { %v1894_v46 = vpop.eup %1893 }
 0x987   :  { %v1087_v49 = vmul.f32 %v1894_v46, %v1070_v44  ;;  %vm1092_vm15 = vweird.f32 %v1894_v46 }
 0x988   :  { %vm1093_vm13 = vmor %vm1091_vm10, %vm1092_vm15 }
 0x989   :  { %v1088_v50 = vsub.f32 1.0, %v1087_v49 }
 0x98b   :  { %v1089_v51 = vmul.f32 %v1894_v46, %v1088_v50 }
 0x98d   :  { %v1090_v54 = vadd.f32 %v1894_v46, %v1089_v51 }
 0x98f   :  { %v1094_v56 = vsel %vm1093_vm13, %v1894_v46, %v1090_v54 }
 0x990   :  { %v1099_v20 = vsel %vm1096_vm1, %v1098_v62, %v1094_v56  ;;  %v240_v56 = vadd.f32 %v2582_v37, %v2527_v14 }
 0x992   :  { %v269_v62 = vadd.f32 %v2513_v19, %v240_v56 }
 0x9ef   :  { %v1116_v2 = vpop.permute.xlu1 %1115 }
 0x9f0   :  { %v1118_v0 = vmul.f32 %v1116_v2, %v1099_v20 }
 0x9f2   :  { %v2636_v3 = vsel %vm384_vm0, %v1118_v0, %v2622_v4  ;;  %v1123_v53 = vpack.c.bf16 %v1118_v0, %v1118_v0 }
 0x9f4   :  { %1728 = vmatmul.msk.bf16.vlgmr.msrb.gmra.mxu1 %vm663_vm7, %v1123_v53  ;;  %1729 = vmatmul.msk.bf16.vlgmr.msrb.gmra.mxu3 %vm663_vm7, %v1123_v53 }
 0xa71   :  { %v1136_v23 = vpop.f32.mrf.mxu1 }
 0xa72   :  { %v1153_v60 = vadd.f32 %v1136_v23, %v266_v55 }
 0xa74   :  { %v1730_v6 = vmul.f32 -1.442695, %v1153_v60 }
 0xa77   :  { %v1149_v59 = vpop.f32.mrf.mxu3 }
 0xa78   :  { %v1154_v38 = vadd.f32 %v1149_v59, %v2498_v58 }
 0xa79   :  { %v1138_v63 = vpop.f32.mrf.mxu1 }
 0xa7a   :  { %1895 = vtanh.f32 %v1154_v38  ;;  %v1731_v26 = vmul.f32 -1.442695, %v1154_v38 }
 0xa7b   :  { %1897 = vpow2.f32 %v1730_v6 }
 0xa7f   :  { %v1151_v7 = vpop.f32.mrf.mxu3 }
 0xa80   :  { %v1896_v4 = vpop.eup %1895 }
 0xa81   :  { %1196 = vrot.lane.b32.xlu2 %v1896_v4, %s1940_s6  ;;  %v1898_v48 = vpop.eup %1897 }
 0xa82   :  { %v1161_v13 = vadd.f32 1.0, %v1898_v48 }
 0xa84   :  { %1899 = vrcp.f32 %v1161_v13  ;;  %v1174_v11 = vand.u32 2147483648, %v1161_v13  ;;  %vm1168_vm2 = vweird.f32 %v1161_v13  ;;  %v1172_v58 = vand.u32 2147483647, %v1161_v13 }
 0xa86   :  { %v1175_v43 = vor.u32 1.1754944e-38, %v1174_v11  ;;  %vm1173_vm5 = vcmp.eq.f32.partialorder %v1172_v58, 8.507059e+37 }
 0xa8a   :  { %v1900_v8 = vpop.eup %1899 }
 0xa8b   :  { %v1164_v36 = vmul.f32 %v1900_v8, %v1161_v13  ;;  %vm1169_vm0 = vweird.f32 %v1900_v8 }
 0xa8c   :  { %vm1170_vm4 = vmor %vm1168_vm2, %vm1169_vm0 }
 0xa8d   :  { %v1165_v57 = vsub.f32 1.0, %v1164_v36 }
 0xa8f   :  { %v1166_v18 = vmul.f32 %v1900_v8, %v1165_v57 }
 0xa91   :  { %v1167_v10 = vadd.f32 %v1900_v8, %v1166_v18 }
 0xa93   :  { %v1171_v24 = vsel %vm1170_vm4, %v1900_v8, %v1167_v10 }
 0xa94   :  { %v1176_v9 = vsel %vm1173_vm5, %v1175_v43, %v1171_v24 }
 0xa95   :  { %v1194_v42 = vmul.f32 %v1176_v9, %v1112_v30 }
 0xadb   :  { %v1197_v29 = vpop.permute.xlu2 %1196 }
 0xadc   :  { %v1199_v47 = vmul.f32 %v1197_v29, %v1176_v9 }
 0xade   :  { %1201 = vrot.lane.b32.xlu0 %v1199_v47, %s1940_s6 }
 0xb50   :  { %v1202_v52 = vpop.permute.xlu0 %1201 }
 0xb51   :  { %v1204_v25 = vadd.f32 %v1202_v52, %v1194_v42 }
 0xb53   :  { %1901 = vtanh.f32 %v1204_v25 }
 0xb54   :  { %1903 = vpow2.f32 %v1731_v26 }
 0xb59   :  { %v1902_v33 = vpop.eup %1901 }
 0xb5a   :  { %1207 = vrot.lane.b32.xlu1 %v1902_v33, %s1940_s6  ;;  %v1904_v45 = vpop.eup %1903 }
 0xb5b   :  { %v1162_v15 = vadd.f32 1.0, %v1904_v45 }
 0xb5d   :  { %1905 = vrcp.f32 %v1162_v15  ;;  %v1189_v44 = vand.u32 2147483648, %v1162_v15  ;;  %vm1183_vm9 = vweird.f32 %v1162_v15  ;;  %v1187_v30 = vand.u32 2147483647, %v1162_v15 }
 0xb5f   :  { %v1190_v49 = vor.u32 1.1754944e-38, %v1189_v44  ;;  %vm1188_vm12 = vcmp.eq.f32.partialorder %v1187_v30, 8.507059e+37 }
 0xb63   :  { %v1906_v61 = vpop.eup %1905 }
 0xb64   :  { %v1179_v28 = vmul.f32 %v1906_v61, %v1162_v15  ;;  %vm1184_vm14 = vweird.f32 %v1906_v61 }
 0xb65   :  { %vm1185_vm11 = vmor %vm1183_vm9, %vm1184_vm14 }
 0xb66   :  { %v1180_v31 = vsub.f32 1.0, %v1179_v28 }
 0xb68   :  { %v1181_v32 = vmul.f32 %v1906_v61, %v1180_v31 }
 0xb6a   :  { %v1182_v5 = vadd.f32 %v1906_v61, %v1181_v32  ;;  %v1677_v32 = vmul.f32 -1.442695, %v2520_v27 }
 0xb6c   :  { %v1186_v46 = vsel %vm1185_vm11, %v1906_v61, %v1182_v5 }
 0xb6d   :  { %v1191_v50 = vsel %vm1188_vm12, %v1190_v49, %v1186_v46 }
 0xbcc   :  { %v1208_v51 = vpop.permute.xlu1 %1207 }
 0xbcd   :  { %v1210_v54 = vmul.f32 %v1208_v51, %v1191_v50 }
 0xbcf   :  { %v2650_v1 = vsel %vm392_vm3, %v1210_v54, %v2636_v3  ;;  %v1215_v34 = vpack.c.bf16 %v1210_v54, %v1210_v54 }
 0xbd1   :  { %1732 = vmatmul.msk.bf16.vlgmr.msrb.gmra.mxu0 %vm663_vm7, %v1215_v34  ;;  %1733 = vmatmul.msk.bf16.vlgmr.msrb.gmra.mxu2 %vm663_vm7, %v1215_v34 }
 0xc4e   :  { %v1228_v20 = vpop.f32.mrf.mxu0 }
 0xc4f   :  { %v1245_v2 = vadd.f32 %v1228_v20, %v269_v62 }
 0xc51   :  { %v1734_v55 = vmul.f32 -1.442695, %v1245_v2 }
 0xc54   :  { %v1241_v0 = vpop.f32.mrf.mxu2 }
 0xc55   :  { %v1246_v53 = vadd.f32 %v1241_v0, %v2505_v17 }
 0xc56   :  { %v1230_v12 = vpop.f32.mrf.mxu0 }
 0xc57   :  { %1907 = vtanh.f32 %v1246_v53  ;;  %v1735_v11 = vmul.f32 -1.442695, %v1246_v53 }
 0xc58   :  { %1909 = vpow2.f32 %v1734_v55 }
 0xc5c   :  { %v1243_v22 = vpop.f32.mrf.mxu2 }
 0xc5d   :  { %v1908_v3 = vpop.eup %1907 }
 0xc5e   :  { %1288 = vrot.lane.b32.xlu2 %v1908_v3, %s1940_s6  ;;  %v1910_v23 = vpop.eup %1909 }
 0xc5f   :  { %v1253_v60 = vadd.f32 1.0, %v1910_v23 }
 0xc61   :  { %1911 = vrcp.f32 %v1253_v60  ;;  %v1266_v7 = vand.u32 2147483648, %v1253_v60  ;;  %vm1260_vm15 = vweird.f32 %v1253_v60  ;;  %v1264_v17 = vand.u32 2147483647, %v1253_v60 }
 0xc63   :  { %v1267_v6 = vor.u32 1.1754944e-38, %v1266_v7  ;;  %vm1265_vm13 = vcmp.eq.f32.partialorder %v1264_v17, 8.507059e+37 }
 0xc67   :  { %v1912_v59 = vpop.eup %1911 }
 0xc68   :  { %v1256_v37 = vmul.f32 %v1912_v59, %v1253_v60  ;;  %vm1261_vm3 = vweird.f32 %v1912_v59 }
 0xc69   :  { %vm1262_vm10 = vmor %vm1260_vm15, %vm1261_vm3 }
 0xc6a   :  { %v1257_v38 = vsub.f32 1.0, %v1256_v37  ;;  %v16_v37 = vstv %s2737_s10 }
 0xc6b   :  { %17 = vst [vmem:[#allocation3] sm:$0x1] %v16_v37 }
 0xc6c   :  { %v1258_v19 = vmul.f32 %v1912_v59, %v1257_v38 }
 0xc6e   :  { %v1259_v63 = vadd.f32 %v1912_v59, %v1258_v19 }
 0xc70   :  { %v1263_v4 = vsel %vm1262_vm10, %v1912_v59, %v1259_v63 }
 0xc71   :  { %v1268_v13 = vsel %vm1265_vm13, %v1267_v6, %v1263_v4 }
 0xc72   :  { %v1286_v36 = vmul.f32 %v1268_v13, %v1204_v25 }
 0xcb8   :  { %v1289_v48 = vpop.permute.xlu2 %1288 }
 0xcb9   :  { %v1291_v8 = vmul.f32 %v1289_v48, %v1268_v13 }
 0xcbb   :  { %1293 = vrot.lane.b32.xlu0 %v1291_v8, %s1940_s6  ;;  %v1487_v8 = vld [vmem:[#allocation3] sm:$0x1] }
 0xd2d   :  { %v1294_v57 = vpop.permute.xlu0 %1293 }
 0xd2e   :  { %v2660_v18 = vadd.f32 %v1294_v57, %v1286_v36  ;;  %v1827_v36 = vld [vmem:[%s2738_s7 + $0x38] sm:$0xff]  ;;  %v1826_v57 = vld [vmem:[%s2738_s7 + $0x30] sm:$0xff] }
 0xd2f   :  { %1466 = vmatpush.bf16.msra.mxu0 %v1827_v36 }
 0xd30   :  { %1913 = vtanh.f32 %v2660_v18 }
 0xd31   :  { %1915 = vpow2.f32 %v1735_v11  ;;  %v1824_v11 = vld [vmem:[%s2738_s7 + $0x20] sm:$0xff] }
 0xd33   :  { %1467 = vmatpush.bf16.msra.mxu0 %v1826_v57 }
 0xd36   :  { %v1914_v10 = vpop.eup %1913 }
 0xd37   :  { %1299 = vrot.lane.b32.xlu1 %v1914_v10, %s1940_s6  ;;  %v1916_v58 = vpop.eup %1915  ;;  %v1825_v10 = vld [vmem:[%s2738_s7 + $0x28] sm:$0xff] }
 0xd38   :  { %v1254_v24 = vadd.f32 1.0, %v1916_v58  ;;  %1468 = vmatpush.bf16.msra.mxu0 %v1825_v10  ;;  %v1823_v58 = vld [vmem:[%s2738_s7 + $0x18] sm:$0xff] }
 0xd3a   :  { %1917 = vrcp.f32 %v1254_v24  ;;  %v1281_v52 = vand.u32 2147483648, %v1254_v24  ;;  %vm1275_vm0 = vweird.f32 %v1254_v24  ;;  %v1279_v25 = vand.u32 2147483647, %v1254_v24 }
 0xd3b   :  { %1919 = vpow2.f32 %v1677_v32 }
 0xd3c   :  { %v1282_v26 = vor.u32 1.1754944e-38, %v1281_v52  ;;  %vm1280_vm4 = vcmp.eq.f32.partialorder %v1279_v25, 8.507059e+37  ;;  %1469 = vmatpush.bf16.msra.mxu0 %v1824_v11 }
 0xd40   :  { %v1918_v43 = vpop.eup %1917  ;;  %1470 = vmatpush.bf16.msra.mxu0 %v1823_v58 }
 0xd41   :  { %v1271_v29 = vmul.f32 %v1918_v43, %v1254_v24  ;;  %vm1276_vm1 = vweird.f32 %v1918_v43  ;;  %v1920_v5 = vpop.eup %1919  ;;  %v1822_v24 = vld [vmem:[%s2738_s7 + $0x10] sm:$0xff] }
 0xd42   :  { %vm1277_vm2 = vmor %vm1275_vm0, %vm1276_vm1  ;;  %v589_v44 = vadd.f32 1.0, %v1920_v5 }
 0xd43   :  { %v1272_v9 = vsub.f32 1.0, %v1271_v29 }
 0xd44   :  { %1921 = vrcp.f32 %v589_v44  ;;  %v601_v40 = vand.u32 2147483648, %v589_v44  ;;  %1471 = vmatpush.bf16.msra.mxu0 %v1822_v24 }
 0xd45   :  { %v1273_v47 = vmul.f32 %v1918_v43, %v1272_v9  ;;  %1923 = vtanh.f32 %v2522_v35  ;;  %v1821_v9 = vld [vmem:[%s2738_s7 + $0x8] sm:$0xff] }
 0xd46   :  { %v602_v62 = vor.u32 1.1754944e-38, %v601_v40 }
 0xd47   :  { %v1274_v42 = vadd.f32 %v1918_v43, %v1273_v47 }
 0xd48   :  { %1472 = vmatpush.bf16.msra.mxu0 %v1821_v9 }
 0xd49   :  { %v1278_v33 = vsel %vm1277_vm2, %v1918_v43, %v1274_v42 }
 0xd4a   :  { %v1283_v45 = vsel %vm1280_vm4, %v1282_v26, %v1278_v33  ;;  %v1922_v30 = vpop.eup %1921 }
 0xd4b   :  { %v591_v46 = vmul.f32 %v1922_v30, %v589_v44  ;;  %vm596_vm5 = vweird.f32 %v1922_v30  ;;  %v1924_v0 = vpop.eup %1923 }
 0xd4d   :  { %v592_v49 = vsub.f32 1.0, %v591_v46 }
 0xd4f   :  { %v593_v50 = vmul.f32 %v1922_v30, %v592_v49 }
 0xd51   :  { %v594_v54 = vadd.f32 %v1922_v30, %v593_v50 }
 0xda9   :  { %v1300_v15 = vpop.permute.xlu1 %1299 }
 0xdaa   :  { %v1302_v61 = vmul.f32 %v1300_v15, %v1283_v45 }
 0xdac   :  { %v2667_v28 = vsel %vm400_vm8, %v1302_v61, %v2650_v1  ;;  %v1307_v31 = vpack.c.bf16 %v1302_v61, %v1302_v61  ;;  %vm595_vm8 = vweird.f32 %v589_v44  ;;  %v599_v1 = vand.u32 2147483647, %v589_v44 }
 0xdad   :  { %vm597_vm14 = vmor %vm595_vm8, %vm596_vm5 }
 0xdae   :  { %1736 = vmatmul.msk.bf16.vlgmr.msra.gmra.mxu1 %vm663_vm7, %v1307_v31  ;;  %1737 = vmatmul.msk.bf16.vlgmr.msra.gmra.mxu3 %vm663_vm7, %v1307_v31  ;;  %v598_v56 = vsel %vm597_vm14, %v1922_v30, %v594_v54  ;;  %vm600_vm9 = vcmp.eq.f32.partialorder %v599_v1, 8.507059e+37 }
 0xdaf   :  { %v2677_v2 = vsel %vm600_vm9, %v602_v62, %v598_v56  ;;  %v1833_v56 = vld [vmem:[%s2739_s8] ss:$0 sm:$0xff] }
 0xdb0   :  { %v606_v53 = vmul.f32 %v1924_v0, %v2677_v2 }
 0xe2b   :  { %v1320_v51 = vpop.f32.mrf.mxu1 }
 0xe31   :  { %v1333_v34 = vpop.f32.mrf.mxu3 }
 0xe32   :  { %v2674_v27 = vadd.f32 %v1333_v34, %v2509_v16  ;;  %v242_v16 = vadd.f32 %v2584_v41, %v2527_v14 }
 0xe33   :  { %v1322_v20 = vpop.f32.mrf.mxu1 }
 0xe34   :  { %1925 = vtanh.f32 %v2674_v27  ;;  %v271_v3 = vadd.f32 %v2515_v21, %v242_v16  ;;  %v1739_v52 = vmul.f32 -1.442695, %v2674_v27  ;;  %v1834_v20 = vld [vmem:[%s2740_s9] ss:$0 sm:$0xff] }
 0xe35   :  { %1927 = vtanh.f32 %v606_v53 }
 0xe36   :  { %v1337_v55 = vadd.f32 %v1320_v51, %v271_v3 }
 0xe38   :  { %v1738_v23 = vmul.f32 -1.442695, %v1337_v55 }
 0xe39   :  { %v1335_v12 = vpop.f32.mrf.mxu3 }
 0xe3a   :  { %v1926_v22 = vpop.eup %1925  ;;  %1929 = vpow2.f32 %v1738_v23 }
 0xe3b   :  { %1380 = vrot.lane.b32.xlu2 %v1926_v22, %s1940_s6  ;;  %v1928_v35 = vpop.eup %1927  ;;  %v1497_v22 = vand.u32 127, %v1496_v39 }
 0xe40   :  { %v1930_v60 = vpop.eup %1929 }
 0xe41   :  { %v1345_v59 = vadd.f32 1.0, %v1930_v60 }
 0xe43   :  { %609 = vrot.lane.b32.xlu2 %v1928_v35, %s1940_s6  ;;  %1931 = vrcp.f32 %v1345_v59  ;;  %v1358_v14 = vand.u32 2147483648, %v1345_v59  ;;  %vm1352_vm12 = vweird.f32 %v1345_v59  ;;  %v1356_v21 = vand.u32 2147483647, %v1345_v59 }
 0xe45   :  { %v1359_v4 = vor.u32 1.1754944e-38, %v1358_v14  ;;  %vm1357_vm15 = vcmp.eq.f32.partialorder %v1356_v21, 8.507059e+37 }
 0xe49   :  { %v1932_v38 = vpop.eup %1931 }
 0xe4a   :  { %v1348_v19 = vmul.f32 %v1932_v38, %v1345_v59  ;;  %vm1353_vm11 = vweird.f32 %v1932_v38 }
 0xe4b   :  { %vm1354_vm3 = vmor %vm1352_vm12, %vm1353_vm11 }
 0xe4c   :  { %v1349_v63 = vsub.f32 1.0, %v1348_v19 }
 0xe4e   :  { %v1350_v7 = vmul.f32 %v1932_v38, %v1349_v63 }
 0xe50   :  { %v1351_v17 = vadd.f32 %v1932_v38, %v1350_v7 }
 0xe52   :  { %v1355_v41 = vsel %vm1354_vm3, %v1932_v38, %v1351_v17 }
 0xe53   :  { %v1360_v48 = vsel %vm1357_vm15, %v1359_v4, %v1355_v41 }
 0xe54   :  { %v1378_v43 = vmul.f32 %v1360_v48, %v2660_v18  ;;  %v1820_v18 = vld [vmem:[%s2738_s7] sm:$0xff] }
 0xe55   :  { %1473 = vmatpush.bf16.msra.mxu0 %v1820_v18 }
 0xe95   :  { %v1381_v6 = vpop.permute.xlu2 %1380 }
 0xe96   :  { %v1383_v13 = vmul.f32 %v1381_v6, %v1360_v48 }
 0xe98   :  { %1385 = vrot.lane.b32.xlu0 %v1383_v13, %s1940_s6 }
 0xe9d   :  { %v610_v46 = vpop.permute.xlu2 %609 }
 0xe9e   :  { %v612_v54 = vmul.f32 %v610_v46, %v2677_v2 }
 0xea0   :  { %1490 = vperm.xlu0 %1830, %v1487_v8  }
 0xf0a   :  { %v1386_v29 = vpop.permute.xlu0 %1385 }
 0xf0b   :  { %v1388_v47 = vadd.f32 %v1386_v29, %v1378_v43 }
 0xf0d   :  { %1933 = vtanh.f32 %v1388_v47 }
 0xf0e   :  { %1935 = vpow2.f32 %v1739_v52 }
 0xf13   :  { %v1934_v42 = vpop.eup %1933 }
 0xf14   :  { %1391 = vrot.lane.b32.xlu1 %v1934_v42, %s1940_s6  ;;  %v1936_v25 = vpop.eup %1935 }
 0xf15   :  { %v1346_v33 = vadd.f32 1.0, %v1936_v25 }
 0xf17   :  { %1937 = vrcp.f32 %v1346_v33  ;;  %v1373_v32 = vand.u32 2147483648, %v1346_v33  ;;  %vm1367_vm13 = vweird.f32 %v1346_v33  ;;  %v1371_v5 = vand.u32 2147483647, %v1346_v33 }
 0xf19   :  { %v1374_v30 = vor.u32 1.1754944e-38, %v1373_v32  ;;  %vm1372_vm0 = vcmp.eq.f32.partialorder %v1371_v5, 8.507059e+37 }
 0xf1d   :  { %v1938_v26 = vpop.eup %1937 }
 0xf1e   :  { %v1363_v45 = vmul.f32 %v1938_v26, %v1346_v33  ;;  %vm1368_vm10 = vweird.f32 %v1938_v26 }
 0xf1f   :  { %vm1369_vm1 = vmor %vm1367_vm13, %vm1368_vm10 }
 0xf20   :  { %v1364_v15 = vsub.f32 1.0, %v1363_v45 }
 0xf22   :  { %v1365_v61 = vmul.f32 %v1938_v26, %v1364_v15 }
 0xf24   :  { %v1366_v31 = vadd.f32 %v1938_v26, %v1365_v61 }
 0xf26   :  { %v1370_v44 = vsel %vm1369_vm1, %v1938_v26, %v1366_v31 }
 0xf27   :  { %v1375_v49 = vsel %vm1372_vm0, %v1374_v30, %v1370_v44 }
 0xf86   :  { %v1392_v50 = vpop.permute.xlu1 %1391 }
 0xf87   :  { %v1394_v51 = vmul.f32 %v1392_v50, %v1375_v49 }
 0xf89   :  { %v1395_v40 = vsel %vm408_vm6, %v1394_v51, %v2667_v28  ;;  %v1491_v28 = vpop.permute.xlu0 %1490  ;;  %vm1500_vm6 = vcmask 57344  }
 0xf8a   :  { %v1396_v1 = vsel %vm663_vm7, %v1395_v40, %v612_v54  ;;  %v1493_v12 = vperm.slane %v1491_v28, 0 }
 0xf8b   :  { %v1397_v34 = vpack.c.bf16 %v1396_v1, %v1396_v1 }
 0xf8d   :  { %1474 = vmatmul.bf16.vlgmr.msra.gmra.mxu0 %v1397_v34 }
0x100a   :  { %v1475_v27 = vpop.f32.mrf.mxu0 }
0x100b   :  { %v1476_v62 = vadd.f32 %v1833_v56, %v1475_v27 }
0x100d   :  { %v1479_v0 = vmax.f32 %v1476_v62, 0.0 }
0x100f   :  { %v1484_v2 = vmul.f32 %v1834_v20, %v1479_v0 }
0x1011   :  { %1485 = vadd.xlane.f32.xlu1 %v1484_v2 }
0x1012   :  { %v1477_v53 = vpop.f32.mrf.mxu0 }
0x1084   :  { %v1486_v35 = vpop.xlane.xlu1 %1485 }
0x1085   :  { %v1494_v16 = vadd.f32 %v1493_v12, %v1486_v35 }
0x1087   :  { %v1498_v3 = vperm.slane %v1494_v16, %v1497_v22 }
0x1089   :  { %1501 = vst.msk [vmem:[%s2741_s11] sm:$0x1] %vm1500_vm6, %v1498_v3 }

</bundles_post_ra>
